<compile_context>
chip_gen: v5e
topology: v5e:2x2
jax: 0.10.0
libtpu: 0.0.40
codegen_flags: <defaults>
</compile_context>

<pallas_src>
import jax
import jax.numpy as jnp
from jax import lax
from jax.experimental import pallas as pl
from jax.experimental.pallas import tpu as pltpu

INPUT_SIZE = 16
HIDDEN_SIZE = 32
NUM_LAYERS = 2
GATE_PAD = 128                      # 3*H = 96 padded to one full 128-lane vreg
RHS_LANES = 2 * GATE_PAD            # 256: [gh0 pad | c1, gh1_n]
LHS_K = 2 * HIDDEN_SIZE + 8         # 72: [h0 | h1 | 1, 0, ...]


def gru2_wavefront_kernel(x_ref, h0_ref, wih0_ref, bih0_ref, rhs_ref,
                          out_ref, hn_ref, gi_scr):
    """Fused 2-layer GRU (layer wavefront), single invocation, VMEM-resident.

    x_ref    : (S*Bp, I)          time-major input, batch padded to Bp (mult of 8)
    h0_ref   : (2, Bp, H)   f32   initial hidden state per layer
    wih0_ref : (I, 128)   mm_dt   layer-0 input->hidden weights (gate dim padded)
    bih0_ref : (1, 128)     f32   layer-0 input bias (padded)
    rhs_ref  : (2H+8, 256) mm_dt  combined recurrent RHS (see _prep_params)
    out_ref  : (S*Bp, H)          layer-1 (top) outputs
    hn_ref   : (2, Bp, H)         final hidden state per layer
    gi_scr   : (S*Bp, 128)  f32   precomputed x @ Wih0 + b_ih0 (all timesteps)
    """
    Bp = hn_ref.shape[1]
    H = hn_ref.shape[2]
    S = out_ref.shape[0] // Bp
    GP = gi_scr.shape[1]
    mm_dtype = rhs_ref.dtype

    # ---- hoisted, loop-invariant work ---------------------------------------
    # Layer-0 input projection for ALL timesteps in one matmul (off the chain).
    gi_scr[...] = jnp.dot(x_ref[...].astype(mm_dtype), wih0_ref[...],
                          preferred_element_type=jnp.float32) + bih0_ref[...]
    rhs = rhs_ref[...]
    # Ones column that folds all recurrent biases into the MXU matmul.
    ones_tail = (lax.broadcasted_iota(jnp.int32, (Bp, LHS_K - 2 * H), 1) == 0
                 ).astype(jnp.float32)

    h0_init = h0_ref[0].astype(jnp.float32)
    h1_init = h0_ref[1].astype(jnp.float32)

    def step(s, carry):
        h0, h1 = carry
        t0 = jnp.minimum(s, S - 1)        # layer-0 time (clamped at epilogue)
        t1 = jnp.maximum(s - 1, 0)        # layer-1 time (clamped at prologue)

        gi0 = gi_scr[pl.ds(pl.multiple_of(t0 * Bp, Bp), Bp), :]   # (Bp, 128)

        # One combined recurrent matmul for both layers (+ all biases).
        lhs = jnp.concatenate([h0, h1, ones_tail], axis=1)        # (Bp, 2H+8)
        gg = jnp.dot(lhs.astype(mm_dtype), rhs,
                     preferred_element_type=jnp.float32)          # (Bp, 256)

        # ---- layer 0, time t0 ----
        rz0 = jax.nn.sigmoid(gi0[:, 0:2 * H] + gg[:, 0:2 * H])    # one 64-lane sigmoid
        r0, z0 = rz0[:, 0:H], rz0[:, H:2 * H]
        n0 = jnp.tanh(gi0[:, 2 * H:3 * H] + r0 * gg[:, 2 * H:3 * H])
        h0_new = (1.0 - z0) * n0 + z0 * h0

        # ---- layer 1, time t1 (input y0_{t1} == the h0 carry) ----
        rz1 = jax.nn.sigmoid(gg[:, GP:GP + 2 * H])
        r1, z1 = rz1[:, 0:H], rz1[:, H:2 * H]
        gh1n = gg[:, GP + 3 * H:GP + 4 * H]
        # c1_n = gi1_n + gh1_n  =>  gi1_n + r1*gh1_n == c1_n - gh1_n + r1*gh1_n
        n1 = jnp.tanh(gg[:, GP + 2 * H:GP + 3 * H] - gh1n + r1 * gh1n)
        h1_new = (1.0 - z1) * n1 + z1 * h1

        # Prologue (s==0) writes a harmless placeholder row that step 1
        # overwrites; outputs are only read back after the kernel completes.
        out_ref[pl.ds(pl.multiple_of(t1 * Bp, Bp), Bp), :] = (
            h1_new.astype(out_ref.dtype))

        # Gate the carries at the two boundary steps (tiny scalar-mask blends;
        # constant-fold under full unroll).
        m0 = (s < S).astype(jnp.float32)       # layer-0 inactive at s == S
        m1 = (s >= 1).astype(jnp.float32)      # layer-1 inactive at s == 0
        h0 = m0 * h0_new + (1.0 - m0) * h0
        h1 = m1 * h1_new + (1.0 - m1) * h1
        return h0, h1

    unroll = True if S + 1 <= 16 else 8        # cap unroll for long sequences
    h0_f, h1_f = lax.fori_loop(0, S + 1, step, (h0_init, h1_init), unroll=unroll)
    hn_ref[0] = h0_f.astype(hn_ref.dtype)      # written once, not per step
    hn_ref[1] = h1_f.astype(hn_ref.dtype)


def _prep_params(params_flat, mm_dtype):
    """Build layer-0 input-projection weights and the combined recurrent RHS.

    Torch layouts: weight_ih_l{k}: (3H, in_k), weight_hh_l{k}: (3H, H),
    bias_*: (3H,). Gate order is [r | z | n].
    """
    (w_ih0, w_hh0, b_ih0, b_hh0, w_ih1, w_hh1, b_ih1, b_hh1) = params_flat
    H = HIDDEN_SIZE
    G = 3 * H

    wih0 = jnp.pad(jnp.transpose(w_ih0), ((0, 0), (0, GATE_PAD - G)))
    bih0 = jnp.pad(b_ih0, (0, GATE_PAD - G)).reshape(1, GATE_PAD)

    rhs = jnp.zeros((LHS_K, RHS_LANES), jnp.float32)
    # h0 rows: layer-0 recurrence and (as y0) layer-1 input projection.
    rhs = rhs.at[0:H, 0:G].set(jnp.transpose(w_hh0))
    rhs = rhs.at[0:H, GATE_PAD:GATE_PAD + G].set(jnp.transpose(w_ih1))
    # h1 rows: layer-1 recurrence (all gates) + separate n-gate copy.
    rhs = rhs.at[H:2 * H, GATE_PAD:GATE_PAD + G].set(jnp.transpose(w_hh1))
    rhs = rhs.at[H:2 * H, GATE_PAD + G:GATE_PAD + G + H].set(
        jnp.transpose(w_hh1[2 * H:3 * H, :]))
    # Ones row: all biases enter through the MXU.
    rhs = rhs.at[2 * H, 0:G].set(b_hh0)
    rhs = rhs.at[2 * H, GATE_PAD:GATE_PAD + G].set(b_ih1 + b_hh1)
    rhs = rhs.at[2 * H, GATE_PAD + G:GATE_PAD + G + H].set(b_hh1[2 * H:3 * H])

    return wih0.astype(mm_dtype), bih0.astype(jnp.float32), rhs.astype(mm_dtype)


def gru2_pallas(x, h0, params_flat, matmul_dtype=jnp.float32):
    """x: (S, B, I); h0: (NUM_LAYERS, B, H); params_flat: 8 arrays (2 layers x 4).

    matmul_dtype: MXU operand dtype (accumulation always f32, gate math always
    f32). Use jnp.bfloat16 on v6e/v7x for the native MXU path.
    """
    S, B, I = x.shape
    H = HIDDEN_SIZE
    # Zero-size early-out (the original case is "zero_size"): Mosaic rejects
    # zero-sized VMEM blocks; PyTorch returns an empty output and h_n == h0.
    if S == 0 or B == 0:
        return jnp.zeros((S, B, H), x.dtype), h0

    Bp = max(8, ((B + 7) // 8) * 8)               # pad batch to 8 sublanes
    xp = jnp.pad(x, ((0, 0), (0, Bp - B), (0, 0))).reshape(S * Bp, I)
    h0p = jnp.pad(h0, ((0, 0), (0, Bp - B), (0, 0))).astype(jnp.float32)

    wih0, bih0, rhs = _prep_params(params_flat, matmul_dtype)

    vmem = pl.BlockSpec(memory_space=pltpu.MemorySpace.VMEM)
    out_flat, hn_p = pl.pallas_call(
        gru2_wavefront_kernel,
        out_shape=(
            jax.ShapeDtypeStruct((S * Bp, H), x.dtype),
            jax.ShapeDtypeStruct((NUM_LAYERS, Bp, H), x.dtype),
        ),
        in_specs=[vmem] * 5,
        out_specs=(vmem, vmem),
        scratch_shapes=[
            pltpu.VMEM((S * Bp, GATE_PAD), jnp.float32),   # gi0, all timesteps
        ],
        # TODO(synk): for large S*B, chunk the gi0 precompute over a grid (h
        # carried in scratch), store gi0 in bf16, emit a lane-dense (S, Bp*H)
        # output slab, and set pltpu.CompilerParams(vmem_limit_bytes=...) for
        # v7x's 64 MiB VMEM. At S=8, B=4 everything fits comfortably.
    )(xp, h0p, wih0, bih0, rhs)

    out = out_flat.reshape(S, Bp, H)[:, :B, :]
    hn = hn_p[:, :B, :]
    return out, hn


@jax.jit
def layer_case_forward(x, y, params_flat):
    """Equivalent of LayerCase.forward(x, y) -> (output, h_n). f32 MXU path."""
    return gru2_pallas(x, y, params_flat, jnp.float32)


@jax.jit
def layer_case_forward_bf16(x, y, params_flat):
    """Same, with bf16 MXU operands (native fast path on v6e/v7x)."""
    return gru2_pallas(x, y, params_flat, jnp.bfloat16)


def init_gru_params(key, input_size, hidden_size, num_layers, dtype=jnp.float32):
    """Deterministic init matching torch.nn.GRU parameter shapes:
    weight_ih_l{k}: (3H, in_k), weight_hh_l{k}: (3H, H),
    bias_ih_l{k}: (3H,), bias_hh_l{k}: (3H,), uniform(-1/sqrt(H), 1/sqrt(H))."""
    params = []
    bound = 1.0 / jnp.sqrt(jnp.asarray(hidden_size, dtype))
    for layer in range(num_layers):
        in_k = input_size if layer == 0 else hidden_size
        key, k1, k2, k3, k4 = jax.random.split(key, 5)
        w_ih = jax.random.uniform(k1, (3 * hidden_size, in_k), dtype, -bound, bound)
        w_hh = jax.random.uniform(k2, (3 * hidden_size, hidden_size), dtype, -bound, bound)
        b_ih = jax.random.uniform(k3, (3 * hidden_size,), dtype, -bound, bound)
        b_hh = jax.random.uniform(k4, (3 * hidden_size,), dtype, -bound, bound)
        params.append((w_ih, w_hh, b_ih, b_hh))
    return params


def gru_reference(x, y, params):
    """Pure-JAX reference (lax.scan) replicating PyTorch GRU semantics."""
    H = HIDDEN_SIZE
    inp = x
    hn_all = []
    for layer in range(NUM_LAYERS):
        w_ih, w_hh, b_ih, b_hh = params[layer]

        def step(h, x_t, w_ih=w_ih, w_hh=w_hh, b_ih=b_ih, b_hh=b_hh):
            gi = x_t @ w_ih.T + b_ih
            gh = h @ w_hh.T + b_hh
            i_r, i_z, i_n = gi[:, :H], gi[:, H:2 * H], gi[:, 2 * H:]
            h_r, h_z, h_n = gh[:, :H], gh[:, H:2 * H], gh[:, 2 * H:]
            r = jax.nn.sigmoid(i_r + h_r)
            z = jax.nn.sigmoid(i_z + h_z)
            n = jnp.tanh(i_n + r * h_n)
            h_new = (1.0 - z) * n + z * h
            return h_new, h_new

        h_last, outs = lax.scan(step, y[layer], inp)
        hn_all.append(h_last)
        inp = outs
    return inp, jnp.stack(hn_all, axis=0)


if __name__ == "__main__":
    key = jax.random.PRNGKey(0)
    k_param, k_x, k_y = jax.random.split(key, 3)

    SEQ, BATCH = 8, 4
    x = jax.random.normal(k_x, (SEQ, BATCH, INPUT_SIZE), jnp.float32)
    y = jax.random.normal(k_y, (NUM_LAYERS, BATCH, HIDDEN_SIZE), jnp.float32)

    params = init_gru_params(k_param, INPUT_SIZE, HIDDEN_SIZE, NUM_LAYERS)
    params_flat = tuple(a for p in params for a in p)

    ref_out, ref_hn = gru_reference(x, y, params)

    # f32-operand MXU path (tolerance allows for the restructured accumulation:
    # wavefront-combined matmul, biases folded in via the ones column).
    out, h_n = layer_case_forward(x, y, params_flat)
    out = jax.block_until_ready(out)
    h_n = jax.block_until_ready(h_n)
    assert out.shape == (SEQ, BATCH, HIDDEN_SIZE)
    assert h_n.shape == (NUM_LAYERS, BATCH, HIDDEN_SIZE)
    assert jnp.allclose(out, ref_out, atol=5e-3, rtol=5e-3), float(
        jnp.max(jnp.abs(out - ref_out)))
    assert jnp.allclose(h_n, ref_hn, atol=5e-3, rtol=5e-3), float(
        jnp.max(jnp.abs(h_n - ref_hn)))

    # bf16-operand MXU path (native fast path on v6e/v7x), looser tolerance.
    out_bf, hn_bf = layer_case_forward_bf16(x, y, params_flat)
    out_bf = jax.block_until_ready(out_bf)
    hn_bf = jax.block_until_ready(hn_bf)
    assert jnp.allclose(out_bf, ref_out, atol=5e-2, rtol=5e-2), float(
        jnp.max(jnp.abs(out_bf - ref_out)))
    assert jnp.allclose(hn_bf, ref_hn, atol=5e-2, rtol=5e-2), float(
        jnp.max(jnp.abs(hn_bf - ref_hn)))

    # Zero-size case (the module's name): pure-JAX early-out, no kernel launch.
    x0 = jnp.zeros((0, BATCH, INPUT_SIZE), jnp.float32)
    out0, hn0 = gru2_pallas(x0, y, params_flat)
    assert out0.shape == (0, BATCH, HIDDEN_SIZE)
    assert jnp.allclose(hn0, y)

    print("KERNEL_OK")
</pallas_src>

<mosaic_0001>
module attributes {stable_mosaic.version = 11 : i64} {
  func.func @gru2_wavefront_kernel(%arg0: memref<64x16xf32, #tpu.memory_space<vmem>>, %arg1: memref<2x8x32xf32, #tpu.memory_space<vmem>>, %arg2: memref<16x128xf32, #tpu.memory_space<vmem>>, %arg3: memref<1x128xf32, #tpu.memory_space<vmem>>, %arg4: memref<72x256xf32, #tpu.memory_space<vmem>>, %arg5: memref<64x32xf32, #tpu.memory_space<vmem>>, %arg6: memref<2x8x32xf32, #tpu.memory_space<vmem>>, %arg7: memref<64x128xf32, #tpu.memory_space<vmem>>) attributes {dimension_semantics = [], scalar_prefetch = 0 : i64, scratch_operands = 1 : i64, tpu.core_type = #tpu.core_type<tc>} {
    %c0 = arith.constant 0 : index
    %c0_0 = arith.constant 0 : index
    %0 = vector.load %arg0[%c0, %c0_0] : memref<64x16xf32, #tpu.memory_space<vmem>>, vector<64x16xf32>
    %c0_1 = arith.constant 0 : index
    %c0_2 = arith.constant 0 : index
    %1 = vector.load %arg2[%c0_1, %c0_2] : memref<16x128xf32, #tpu.memory_space<vmem>>, vector<16x128xf32>
    %cst = arith.constant dense<0.000000e+00> : vector<64x128xf32>
    %2 = tpu.matmul %0, %1, %cst {dimension_numbers = #tpu.dot_dimension_numbers<[1], [0], [0], [1], [0, 0, 1, 1], [], []>} : vector<64x16xf32>, vector<16x128xf32>, vector<64x128xf32> -> vector<64x128xf32>
    %c0_3 = arith.constant 0 : index
    %c0_4 = arith.constant 0 : index
    %3 = vector.load %arg3[%c0_3, %c0_4] : memref<1x128xf32, #tpu.memory_space<vmem>>, vector<1x128xf32>
    %4 = vector.broadcast %3 : vector<1x128xf32> to vector<64x128xf32>
    %5 = arith.addf %2, %4 : vector<64x128xf32>
    %c0_5 = arith.constant 0 : index
    %c0_6 = arith.constant 0 : index
    %6 = vector.load %arg7[%c0_5, %c0_6] : memref<64x128xf32, #tpu.memory_space<vmem>>, vector<64x128xf32>
    tpu.vector_store %arg7[%c0_5, %c0_6], %5 {strides = array<i32>} : memref<64x128xf32, #tpu.memory_space<vmem>>, vector<64x128xf32>,
    %c0_7 = arith.constant 0 : index
    %c0_8 = arith.constant 0 : index
    %7 = vector.load %arg4[%c0_7, %c0_8] : memref<72x256xf32, #tpu.memory_space<vmem>>, vector<72x256xf32>
    %8 = tpu.iota {dimensions = array<i32: 1>} : vector<8x8xi32>
    %c0_i32 = arith.constant 0 : i32
    %9 = vector.broadcast %c0_i32 : i32 to vector<8x8xi32>
    %10 = arith.cmpi eq, %8, %9 : vector<8x8xi32>
    %11 = arith.extui %10 : vector<8x8xi1> to vector<8x8xi32>
    %12 = arith.sitofp %11 : vector<8x8xi32> to vector<8x8xf32>
    %c0_9 = arith.constant 0 : index
    %c0_10 = arith.constant 0 : index
    %c0_11 = arith.constant 0 : index
    %13 = vector.load %arg1[%c0_9, %c0_10, %c0_11] : memref<2x8x32xf32, #tpu.memory_space<vmem>>, vector<1x8x32xf32>
    %14 = vector.shape_cast %13 : vector<1x8x32xf32> to vector<8x32xf32>
    %c1 = arith.constant 1 : index
    %c0_12 = arith.constant 0 : index
    %c0_13 = arith.constant 0 : index
    %15 = vector.load %arg1[%c1, %c0_12, %c0_13] : memref<2x8x32xf32, #tpu.memory_space<vmem>>, vector<1x8x32xf32>
    %16 = vector.shape_cast %15 : vector<1x8x32xf32> to vector<8x32xf32>
    %c0_i32_14 = arith.constant 0 : i32
    %c7_i32 = arith.constant 7 : i32
    %17 = arith.minsi %c0_i32_14, %c7_i32 : i32
    %c1_i32 = arith.constant 1 : i32
    %18 = arith.subi %c0_i32_14, %c1_i32 : i32
    %c0_i32_15 = arith.constant 0 : i32
    %19 = arith.maxsi %18, %c0_i32_15 : i32
    %c8_i32 = arith.constant 8 : i32
    %20 = arith.muli %17, %c8_i32 : i32
    %21 = tpu.assume_multiple %20, 8 : i32
    %22 = arith.index_cast %21 : i32 to index
    %c0_16 = arith.constant 0 : index
    %23 = vector.load %arg7[%22, %c0_16] : memref<64x128xf32, #tpu.memory_space<vmem>>, vector<8x128xf32>
    %24 = tpu.concatenate %14, %16, %12 in 1 : vector<8x32xf32>, vector<8x32xf32>, vector<8x8xf32> -> vector<8x72xf32>
    %cst_17 = arith.constant dense<0.000000e+00> : vector<8x256xf32>
    %25 = tpu.matmul %24, %7, %cst_17 {dimension_numbers = #tpu.dot_dimension_numbers<[1], [0], [0], [1], [0, 0, 1, 1], [], []>} : vector<8x72xf32>, vector<72x256xf32>, vector<8x256xf32> -> vector<8x256xf32>
    %26 = vector.extract_strided_slice %23 {offsets = [0, 0], sizes = [8, 64], strides = [1, 1]} : vector<8x128xf32> to vector<8x64xf32>
    %27 = vector.extract_strided_slice %25 {offsets = [0, 0], sizes = [8, 64], strides = [1, 1]} : vector<8x256xf32> to vector<8x64xf32>
    %28 = arith.addf %26, %27 : vector<8x64xf32>
    %29 = arith.negf %28 : vector<8x64xf32>
    %30 = math.exp %29 : vector<8x64xf32>
    %cst_18 = arith.constant 1.000000e+00 : f32
    %31 = vector.broadcast %cst_18 : f32 to vector<8x64xf32>
    %32 = arith.addf %31, %30 : vector<8x64xf32>
    %33 = arith.divf %31, %32 : vector<8x64xf32>
    %34 = vector.extract_strided_slice %33 {offsets = [0, 0], sizes = [8, 32], strides = [1, 1]} : vector<8x64xf32> to vector<8x32xf32>
    %35 = vector.extract_strided_slice %33 {offsets = [0, 32], sizes = [8, 32], strides = [1, 1]} : vector<8x64xf32> to vector<8x32xf32>
    %36 = vector.extract_strided_slice %23 {offsets = [0, 64], sizes = [8, 32], strides = [1, 1]} : vector<8x128xf32> to vector<8x32xf32>
    %37 = vector.extract_strided_slice %25 {offsets = [0, 64], sizes = [8, 32], strides = [1, 1]} : vector<8x256xf32> to vector<8x32xf32>
    %38 = arith.mulf %34, %37 : vector<8x32xf32>
    %39 = arith.addf %36, %38 : vector<8x32xf32>
    %40 = math.tanh %39 : vector<8x32xf32>
    %cst_19 = arith.constant 1.000000e+00 : f32
    %41 = vector.broadcast %cst_19 : f32 to vector<8x32xf32>
    %42 = arith.subf %41, %35 : vector<8x32xf32>
    %43 = arith.mulf %42, %40 : vector<8x32xf32>
    %44 = arith.mulf %35, %14 : vector<8x32xf32>
    %45 = arith.addf %43, %44 : vector<8x32xf32>
    %46 = vector.extract_strided_slice %25 {offsets = [0, 128], sizes = [8, 64], strides = [1, 1]} : vector<8x256xf32> to vector<8x64xf32>
    %47 = arith.negf %46 : vector<8x64xf32>
    %48 = math.exp %47 : vector<8x64xf32>
    %cst_20 = arith.constant 1.000000e+00 : f32
    %49 = vector.broadcast %cst_20 : f32 to vector<8x64xf32>
    %50 = arith.addf %49, %48 : vector<8x64xf32>
    %51 = arith.divf %49, %50 : vector<8x64xf32>
    %52 = vector.extract_strided_slice %51 {offsets = [0, 0], sizes = [8, 32], strides = [1, 1]} : vector<8x64xf32> to vector<8x32xf32>
    %53 = vector.extract_strided_slice %51 {offsets = [0, 32], sizes = [8, 32], strides = [1, 1]} : vector<8x64xf32> to vector<8x32xf32>
    %54 = vector.extract_strided_slice %25 {offsets = [0, 224], sizes = [8, 32], strides = [1, 1]} : vector<8x256xf32> to vector<8x32xf32>
    %55 = vector.extract_strided_slice %25 {offsets = [0, 192], sizes = [8, 32], strides = [1, 1]} : vector<8x256xf32> to vector<8x32xf32>
    %56 = arith.subf %55, %54 : vector<8x32xf32>
    %57 = arith.mulf %52, %54 : vector<8x32xf32>
    %58 = arith.addf %56, %57 : vector<8x32xf32>
    %59 = math.tanh %58 : vector<8x32xf32>
    %cst_21 = arith.constant 1.000000e+00 : f32
    %60 = vector.broadcast %cst_21 : f32 to vector<8x32xf32>
    %61 = arith.subf %60, %53 : vector<8x32xf32>
    %62 = arith.mulf %61, %59 : vector<8x32xf32>
    %63 = arith.mulf %53, %16 : vector<8x32xf32>
    %64 = arith.addf %62, %63 : vector<8x32xf32>
    %c8_i32_22 = arith.constant 8 : i32
    %65 = arith.muli %19, %c8_i32_22 : i32
    %66 = tpu.assume_multiple %65, 8 : i32
    %67 = arith.index_cast %66 : i32 to index
    %c0_23 = arith.constant 0 : index
    %68 = vector.load %arg5[%67, %c0_23] : memref<64x32xf32, #tpu.memory_space<vmem>>, vector<8x32xf32>
    tpu.vector_store %arg5[%67, %c0_23], %64 {strides = array<i32>} : memref<64x32xf32, #tpu.memory_space<vmem>>, vector<8x32xf32>,
    %c8_i32_24 = arith.constant 8 : i32
    %69 = arith.cmpi slt, %c0_i32_14, %c8_i32_24 : i32
    %70 = arith.extui %69 : i1 to i32
    %71 = arith.sitofp %70 : i32 to f32
    %c1_i32_25 = arith.constant 1 : i32
    %72 = arith.cmpi sge, %c0_i32_14, %c1_i32_25 : i32
    %73 = arith.extui %72 : i1 to i32
    %74 = arith.sitofp %73 : i32 to f32
    %75 = vector.broadcast %71 : f32 to vector<8x32xf32>
    %76 = arith.mulf %75, %45 : vector<8x32xf32>
    %cst_26 = arith.constant 1.000000e+00 : f32
    %77 = arith.subf %cst_26, %71 : f32
    %78 = vector.broadcast %77 : f32 to vector<8x32xf32>
    %79 = arith.mulf %78, %14 : vector<8x32xf32>
    %80 = arith.addf %76, %79 : vector<8x32xf32>
    %81 = vector.broadcast %74 : f32 to vector<8x32xf32>
    %82 = arith.mulf %81, %64 : vector<8x32xf32>
    %cst_27 = arith.constant 1.000000e+00 : f32
    %83 = arith.subf %cst_27, %74 : f32
    %84 = vector.broadcast %83 : f32 to vector<8x32xf32>
    %85 = arith.mulf %84, %16 : vector<8x32xf32>
    %86 = arith.addf %82, %85 : vector<8x32xf32>
    %c1_i32_28 = arith.constant 1 : i32
    %c7_i32_29 = arith.constant 7 : i32
    %87 = arith.minsi %c1_i32_28, %c7_i32_29 : i32
    %c1_i32_30 = arith.constant 1 : i32
    %88 = arith.subi %c1_i32_28, %c1_i32_30 : i32
    %c0_i32_31 = arith.constant 0 : i32
    %89 = arith.maxsi %88, %c0_i32_31 : i32
    %c8_i32_32 = arith.constant 8 : i32
    %90 = arith.muli %87, %c8_i32_32 : i32
    %91 = tpu.assume_multiple %90, 8 : i32
    %92 = arith.index_cast %91 : i32 to index
    %c0_33 = arith.constant 0 : index
    %93 = vector.load %arg7[%92, %c0_33] : memref<64x128xf32, #tpu.memory_space<vmem>>, vector<8x128xf32>
    %94 = tpu.concatenate %80, %86, %12 in 1 : vector<8x32xf32>, vector<8x32xf32>, vector<8x8xf32> -> vector<8x72xf32>
    %cst_34 = arith.constant dense<0.000000e+00> : vector<8x256xf32>
    %95 = tpu.matmul %94, %7, %cst_34 {dimension_numbers = #tpu.dot_dimension_numbers<[1], [0], [0], [1], [0, 0, 1, 1], [], []>} : vector<8x72xf32>, vector<72x256xf32>, vector<8x256xf32> -> vector<8x256xf32>
    %96 = vector.extract_strided_slice %93 {offsets = [0, 0], sizes = [8, 64], strides = [1, 1]} : vector<8x128xf32> to vector<8x64xf32>
    %97 = vector.extract_strided_slice %95 {offsets = [0, 0], sizes = [8, 64], strides = [1, 1]} : vector<8x256xf32> to vector<8x64xf32>
    %98 = arith.addf %96, %97 : vector<8x64xf32>
    %99 = arith.negf %98 : vector<8x64xf32>
    %100 = math.exp %99 : vector<8x64xf32>
    %cst_35 = arith.constant 1.000000e+00 : f32
    %101 = vector.broadcast %cst_35 : f32 to vector<8x64xf32>
    %102 = arith.addf %101, %100 : vector<8x64xf32>
    %103 = arith.divf %101, %102 : vector<8x64xf32>
    %104 = vector.extract_strided_slice %103 {offsets = [0, 0], sizes = [8, 32], strides = [1, 1]} : vector<8x64xf32> to vector<8x32xf32>
    %105 = vector.extract_strided_slice %103 {offsets = [0, 32], sizes = [8, 32], strides = [1, 1]} : vector<8x64xf32> to vector<8x32xf32>
    %106 = vector.extract_strided_slice %93 {offsets = [0, 64], sizes = [8, 32], strides = [1, 1]} : vector<8x128xf32> to vector<8x32xf32>
    %107 = vector.extract_strided_slice %95 {offsets = [0, 64], sizes = [8, 32], strides = [1, 1]} : vector<8x256xf32> to vector<8x32xf32>
    %108 = arith.mulf %104, %107 : vector<8x32xf32>
    %109 = arith.addf %106, %108 : vector<8x32xf32>
    %110 = math.tanh %109 : vector<8x32xf32>
    %cst_36 = arith.constant 1.000000e+00 : f32
    %111 = vector.broadcast %cst_36 : f32 to vector<8x32xf32>
    %112 = arith.subf %111, %105 : vector<8x32xf32>
    %113 = arith.mulf %112, %110 : vector<8x32xf32>
    %114 = arith.mulf %105, %80 : vector<8x32xf32>
    %115 = arith.addf %113, %114 : vector<8x32xf32>
    %116 = vector.extract_strided_slice %95 {offsets = [0, 128], sizes = [8, 64], strides = [1, 1]} : vector<8x256xf32> to vector<8x64xf32>
    %117 = arith.negf %116 : vector<8x64xf32>
    %118 = math.exp %117 : vector<8x64xf32>
    %cst_37 = arith.constant 1.000000e+00 : f32
    %119 = vector.broadcast %cst_37 : f32 to vector<8x64xf32>
    %120 = arith.addf %119, %118 : vector<8x64xf32>
    %121 = arith.divf %119, %120 : vector<8x64xf32>
    %122 = vector.extract_strided_slice %121 {offsets = [0, 0], sizes = [8, 32], strides = [1, 1]} : vector<8x64xf32> to vector<8x32xf32>
    %123 = vector.extract_strided_slice %121 {offsets = [0, 32], sizes = [8, 32], strides = [1, 1]} : vector<8x64xf32> to vector<8x32xf32>
    %124 = vector.extract_strided_slice %95 {offsets = [0, 224], sizes = [8, 32], strides = [1, 1]} : vector<8x256xf32> to vector<8x32xf32>
    %125 = vector.extract_strided_slice %95 {offsets = [0, 192], sizes = [8, 32], strides = [1, 1]} : vector<8x256xf32> to vector<8x32xf32>
    %126 = arith.subf %125, %124 : vector<8x32xf32>
    %127 = arith.mulf %122, %124 : vector<8x32xf32>
    %128 = arith.addf %126, %127 : vector<8x32xf32>
    %129 = math.tanh %128 : vector<8x32xf32>
    %cst_38 = arith.constant 1.000000e+00 : f32
    %130 = vector.broadcast %cst_38 : f32 to vector<8x32xf32>
    %131 = arith.subf %130, %123 : vector<8x32xf32>
    %132 = arith.mulf %131, %129 : vector<8x32xf32>
    %133 = arith.mulf %123, %86 : vector<8x32xf32>
    %134 = arith.addf %132, %133 : vector<8x32xf32>
    %c8_i32_39 = arith.constant 8 : i32
    %135 = arith.muli %89, %c8_i32_39 : i32
    %136 = tpu.assume_multiple %135, 8 : i32
    %137 = arith.index_cast %136 : i32 to index
    %c0_40 = arith.constant 0 : index
    %138 = vector.load %arg5[%137, %c0_40] : memref<64x32xf32, #tpu.memory_space<vmem>>, vector<8x32xf32>
    tpu.vector_store %arg5[%137, %c0_40], %134 {strides = array<i32>} : memref<64x32xf32, #tpu.memory_space<vmem>>, vector<8x32xf32>,
    %c8_i32_41 = arith.constant 8 : i32
    %139 = arith.cmpi slt, %c1_i32_28, %c8_i32_41 : i32
    %140 = arith.extui %139 : i1 to i32
    %141 = arith.sitofp %140 : i32 to f32
    %c1_i32_42 = arith.constant 1 : i32
    %142 = arith.cmpi sge, %c1_i32_28, %c1_i32_42 : i32
    %143 = arith.extui %142 : i1 to i32
    %144 = arith.sitofp %143 : i32 to f32
    %145 = vector.broadcast %141 : f32 to vector<8x32xf32>
    %146 = arith.mulf %145, %115 : vector<8x32xf32>
    %cst_43 = arith.constant 1.000000e+00 : f32
    %147 = arith.subf %cst_43, %141 : f32
    %148 = vector.broadcast %147 : f32 to vector<8x32xf32>
    %149 = arith.mulf %148, %80 : vector<8x32xf32>
    %150 = arith.addf %146, %149 : vector<8x32xf32>
    %151 = vector.broadcast %144 : f32 to vector<8x32xf32>
    %152 = arith.mulf %151, %134 : vector<8x32xf32>
    %cst_44 = arith.constant 1.000000e+00 : f32
    %153 = arith.subf %cst_44, %144 : f32
    %154 = vector.broadcast %153 : f32 to vector<8x32xf32>
    %155 = arith.mulf %154, %86 : vector<8x32xf32>
    %156 = arith.addf %152, %155 : vector<8x32xf32>
    %c2_i32 = arith.constant 2 : i32
    %c7_i32_45 = arith.constant 7 : i32
    %157 = arith.minsi %c2_i32, %c7_i32_45 : i32
    %c1_i32_46 = arith.constant 1 : i32
    %158 = arith.subi %c2_i32, %c1_i32_46 : i32
    %c0_i32_47 = arith.constant 0 : i32
    %159 = arith.maxsi %158, %c0_i32_47 : i32
    %c8_i32_48 = arith.constant 8 : i32
    %160 = arith.muli %157, %c8_i32_48 : i32
    %161 = tpu.assume_multiple %160, 8 : i32
    %162 = arith.index_cast %161 : i32 to index
    %c0_49 = arith.constant 0 : index
    %163 = vector.load %arg7[%162, %c0_49] : memref<64x128xf32, #tpu.memory_space<vmem>>, vector<8x128xf32>
    %164 = tpu.concatenate %150, %156, %12 in 1 : vector<8x32xf32>, vector<8x32xf32>, vector<8x8xf32> -> vector<8x72xf32>
    %cst_50 = arith.constant dense<0.000000e+00> : vector<8x256xf32>
    %165 = tpu.matmul %164, %7, %cst_50 {dimension_numbers = #tpu.dot_dimension_numbers<[1], [0], [0], [1], [0, 0, 1, 1], [], []>} : vector<8x72xf32>, vector<72x256xf32>, vector<8x256xf32> -> vector<8x256xf32>
    %166 = vector.extract_strided_slice %163 {offsets = [0, 0], sizes = [8, 64], strides = [1, 1]} : vector<8x128xf32> to vector<8x64xf32>
    %167 = vector.extract_strided_slice %165 {offsets = [0, 0], sizes = [8, 64], strides = [1, 1]} : vector<8x256xf32> to vector<8x64xf32>
    %168 = arith.addf %166, %167 : vector<8x64xf32>
    %169 = arith.negf %168 : vector<8x64xf32>
    %170 = math.exp %169 : vector<8x64xf32>
    %cst_51 = arith.constant 1.000000e+00 : f32
    %171 = vector.broadcast %cst_51 : f32 to vector<8x64xf32>
    %172 = arith.addf %171, %170 : vector<8x64xf32>
    %173 = arith.divf %171, %172 : vector<8x64xf32>
    %174 = vector.extract_strided_slice %173 {offsets = [0, 0], sizes = [8, 32], strides = [1, 1]} : vector<8x64xf32> to vector<8x32xf32>
    %175 = vector.extract_strided_slice %173 {offsets = [0, 32], sizes = [8, 32], strides = [1, 1]} : vector<8x64xf32> to vector<8x32xf32>
    %176 = vector.extract_strided_slice %163 {offsets = [0, 64], sizes = [8, 32], strides = [1, 1]} : vector<8x128xf32> to vector<8x32xf32>
    %177 = vector.extract_strided_slice %165 {offsets = [0, 64], sizes = [8, 32], strides = [1, 1]} : vector<8x256xf32> to vector<8x32xf32>
    %178 = arith.mulf %174, %177 : vector<8x32xf32>
    %179 = arith.addf %176, %178 : vector<8x32xf32>
    %180 = math.tanh %179 : vector<8x32xf32>
    %cst_52 = arith.constant 1.000000e+00 : f32
    %181 = vector.broadcast %cst_52 : f32 to vector<8x32xf32>
    %182 = arith.subf %181, %175 : vector<8x32xf32>
    %183 = arith.mulf %182, %180 : vector<8x32xf32>
    %184 = arith.mulf %175, %150 : vector<8x32xf32>
    %185 = arith.addf %183, %184 : vector<8x32xf32>
    %186 = vector.extract_strided_slice %165 {offsets = [0, 128], sizes = [8, 64], strides = [1, 1]} : vector<8x256xf32> to vector<8x64xf32>
    %187 = arith.negf %186 : vector<8x64xf32>
    %188 = math.exp %187 : vector<8x64xf32>
    %cst_53 = arith.constant 1.000000e+00 : f32
    %189 = vector.broadcast %cst_53 : f32 to vector<8x64xf32>
    %190 = arith.addf %189, %188 : vector<8x64xf32>
    %191 = arith.divf %189, %190 : vector<8x64xf32>
    %192 = vector.extract_strided_slice %191 {offsets = [0, 0], sizes = [8, 32], strides = [1, 1]} : vector<8x64xf32> to vector<8x32xf32>
    %193 = vector.extract_strided_slice %191 {offsets = [0, 32], sizes = [8, 32], strides = [1, 1]} : vector<8x64xf32> to vector<8x32xf32>
    %194 = vector.extract_strided_slice %165 {offsets = [0, 224], sizes = [8, 32], strides = [1, 1]} : vector<8x256xf32> to vector<8x32xf32>
    %195 = vector.extract_strided_slice %165 {offsets = [0, 192], sizes = [8, 32], strides = [1, 1]} : vector<8x256xf32> to vector<8x32xf32>
    %196 = arith.subf %195, %194 : vector<8x32xf32>
    %197 = arith.mulf %192, %194 : vector<8x32xf32>
    %198 = arith.addf %196, %197 : vector<8x32xf32>
    %199 = math.tanh %198 : vector<8x32xf32>
    %cst_54 = arith.constant 1.000000e+00 : f32
    %200 = vector.broadcast %cst_54 : f32 to vector<8x32xf32>
    %201 = arith.subf %200, %193 : vector<8x32xf32>
    %202 = arith.mulf %201, %199 : vector<8x32xf32>
    %203 = arith.mulf %193, %156 : vector<8x32xf32>
    %204 = arith.addf %202, %203 : vector<8x32xf32>
    %c8_i32_55 = arith.constant 8 : i32
    %205 = arith.muli %159, %c8_i32_55 : i32
    %206 = tpu.assume_multiple %205, 8 : i32
    %207 = arith.index_cast %206 : i32 to index
    %c0_56 = arith.constant 0 : index
    %208 = vector.load %arg5[%207, %c0_56] : memref<64x32xf32, #tpu.memory_space<vmem>>, vector<8x32xf32>
    tpu.vector_store %arg5[%207, %c0_56], %204 {strides = array<i32>} : memref<64x32xf32, #tpu.memory_space<vmem>>, vector<8x32xf32>,
    %c8_i32_57 = arith.constant 8 : i32
    %209 = arith.cmpi slt, %c2_i32, %c8_i32_57 : i32
    %210 = arith.extui %209 : i1 to i32
    %211 = arith.sitofp %210 : i32 to f32
    %c1_i32_58 = arith.constant 1 : i32
    %212 = arith.cmpi sge, %c2_i32, %c1_i32_58 : i32
    %213 = arith.extui %212 : i1 to i32
    %214 = arith.sitofp %213 : i32 to f32
    %215 = vector.broadcast %211 : f32 to vector<8x32xf32>
    %216 = arith.mulf %215, %185 : vector<8x32xf32>
    %cst_59 = arith.constant 1.000000e+00 : f32
    %217 = arith.subf %cst_59, %211 : f32
    %218 = vector.broadcast %217 : f32 to vector<8x32xf32>
    %219 = arith.mulf %218, %150 : vector<8x32xf32>
    %220 = arith.addf %216, %219 : vector<8x32xf32>
    %221 = vector.broadcast %214 : f32 to vector<8x32xf32>
    %222 = arith.mulf %221, %204 : vector<8x32xf32>
    %cst_60 = arith.constant 1.000000e+00 : f32
    %223 = arith.subf %cst_60, %214 : f32
    %224 = vector.broadcast %223 : f32 to vector<8x32xf32>
    %225 = arith.mulf %224, %156 : vector<8x32xf32>
    %226 = arith.addf %222, %225 : vector<8x32xf32>
    %c3_i32 = arith.constant 3 : i32
    %c7_i32_61 = arith.constant 7 : i32
    %227 = arith.minsi %c3_i32, %c7_i32_61 : i32
    %c1_i32_62 = arith.constant 1 : i32
    %228 = arith.subi %c3_i32, %c1_i32_62 : i32
    %c0_i32_63 = arith.constant 0 : i32
    %229 = arith.maxsi %228, %c0_i32_63 : i32
    %c8_i32_64 = arith.constant 8 : i32
    %230 = arith.muli %227, %c8_i32_64 : i32
    %231 = tpu.assume_multiple %230, 8 : i32
    %232 = arith.index_cast %231 : i32 to index
    %c0_65 = arith.constant 0 : index
    %233 = vector.load %arg7[%232, %c0_65] : memref<64x128xf32, #tpu.memory_space<vmem>>, vector<8x128xf32>
    %234 = tpu.concatenate %220, %226, %12 in 1 : vector<8x32xf32>, vector<8x32xf32>, vector<8x8xf32> -> vector<8x72xf32>
    %cst_66 = arith.constant dense<0.000000e+00> : vector<8x256xf32>
    %235 = tpu.matmul %234, %7, %cst_66 {dimension_numbers = #tpu.dot_dimension_numbers<[1], [0], [0], [1], [0, 0, 1, 1], [], []>} : vector<8x72xf32>, vector<72x256xf32>, vector<8x256xf32> -> vector<8x256xf32>
    %236 = vector.extract_strided_slice %233 {offsets = [0, 0], sizes = [8, 64], strides = [1, 1]} : vector<8x128xf32> to vector<8x64xf32>
    %237 = vector.extract_strided_slice %235 {offsets = [0, 0], sizes = [8, 64], strides = [1, 1]} : vector<8x256xf32> to vector<8x64xf32>
    %238 = arith.addf %236, %237 : vector<8x64xf32>
    %239 = arith.negf %238 : vector<8x64xf32>
    %240 = math.exp %239 : vector<8x64xf32>
    %cst_67 = arith.constant 1.000000e+00 : f32
    %241 = vector.broadcast %cst_67 : f32 to vector<8x64xf32>
    %242 = arith.addf %241, %240 : vector<8x64xf32>
    %243 = arith.divf %241, %242 : vector<8x64xf32>
    %244 = vector.extract_strided_slice %243 {offsets = [0, 0], sizes = [8, 32], strides = [1, 1]} : vector<8x64xf32> to vector<8x32xf32>
    %245 = vector.extract_strided_slice %243 {offsets = [0, 32], sizes = [8, 32], strides = [1, 1]} : vector<8x64xf32> to vector<8x32xf32>
    %246 = vector.extract_strided_slice %233 {offsets = [0, 64], sizes = [8, 32], strides = [1, 1]} : vector<8x128xf32> to vector<8x32xf32>
    %247 = vector.extract_strided_slice %235 {offsets = [0, 64], sizes = [8, 32], strides = [1, 1]} : vector<8x256xf32> to vector<8x32xf32>
    %248 = arith.mulf %244, %247 : vector<8x32xf32>
    %249 = arith.addf %246, %248 : vector<8x32xf32>
    %250 = math.tanh %249 : vector<8x32xf32>
    %cst_68 = arith.constant 1.000000e+00 : f32
    %251 = vector.broadcast %cst_68 : f32 to vector<8x32xf32>
    %252 = arith.subf %251, %245 : vector<8x32xf32>
    %253 = arith.mulf %252, %250 : vector<8x32xf32>
    %254 = arith.mulf %245, %220 : vector<8x32xf32>
    %255 = arith.addf %253, %254 : vector<8x32xf32>
    %256 = vector.extract_strided_slice %235 {offsets = [0, 128], sizes = [8, 64], strides = [1, 1]} : vector<8x256xf32> to vector<8x64xf32>
    %257 = arith.negf %256 : vector<8x64xf32>
    %258 = math.exp %257 : vector<8x64xf32>
    %cst_69 = arith.constant 1.000000e+00 : f32
    %259 = vector.broadcast %cst_69 : f32 to vector<8x64xf32>
    %260 = arith.addf %259, %258 : vector<8x64xf32>
    %261 = arith.divf %259, %260 : vector<8x64xf32>
    %262 = vector.extract_strided_slice %261 {offsets = [0, 0], sizes = [8, 32], strides = [1, 1]} : vector<8x64xf32> to vector<8x32xf32>
    %263 = vector.extract_strided_slice %261 {offsets = [0, 32], sizes = [8, 32], strides = [1, 1]} : vector<8x64xf32> to vector<8x32xf32>
    %264 = vector.extract_strided_slice %235 {offsets = [0, 224], sizes = [8, 32], strides = [1, 1]} : vector<8x256xf32> to vector<8x32xf32>
    %265 = vector.extract_strided_slice %235 {offsets = [0, 192], sizes = [8, 32], strides = [1, 1]} : vector<8x256xf32> to vector<8x32xf32>
    %266 = arith.subf %265, %264 : vector<8x32xf32>
    %267 = arith.mulf %262, %264 : vector<8x32xf32>
    %268 = arith.addf %266, %267 : vector<8x32xf32>
    %269 = math.tanh %268 : vector<8x32xf32>
    %cst_70 = arith.constant 1.000000e+00 : f32
    %270 = vector.broadcast %cst_70 : f32 to vector<8x32xf32>
    %271 = arith.subf %270, %263 : vector<8x32xf32>
    %272 = arith.mulf %271, %269 : vector<8x32xf32>
    %273 = arith.mulf %263, %226 : vector<8x32xf32>
    %274 = arith.addf %272, %273 : vector<8x32xf32>
    %c8_i32_71 = arith.constant 8 : i32
    %275 = arith.muli %229, %c8_i32_71 : i32
    %276 = tpu.assume_multiple %275, 8 : i32
    %277 = arith.index_cast %276 : i32 to index
    %c0_72 = arith.constant 0 : index
    %278 = vector.load %arg5[%277, %c0_72] : memref<64x32xf32, #tpu.memory_space<vmem>>, vector<8x32xf32>
    tpu.vector_store %arg5[%277, %c0_72], %274 {strides = array<i32>} : memref<64x32xf32, #tpu.memory_space<vmem>>, vector<8x32xf32>,
    %c8_i32_73 = arith.constant 8 : i32
    %279 = arith.cmpi slt, %c3_i32, %c8_i32_73 : i32
    %280 = arith.extui %279 : i1 to i32
    %281 = arith.sitofp %280 : i32 to f32
    %c1_i32_74 = arith.constant 1 : i32
    %282 = arith.cmpi sge, %c3_i32, %c1_i32_74 : i32
    %283 = arith.extui %282 : i1 to i32
    %284 = arith.sitofp %283 : i32 to f32
    %285 = vector.broadcast %281 : f32 to vector<8x32xf32>
    %286 = arith.mulf %285, %255 : vector<8x32xf32>
    %cst_75 = arith.constant 1.000000e+00 : f32
    %287 = arith.subf %cst_75, %281 : f32
    %288 = vector.broadcast %287 : f32 to vector<8x32xf32>
    %289 = arith.mulf %288, %220 : vector<8x32xf32>
    %290 = arith.addf %286, %289 : vector<8x32xf32>
    %291 = vector.broadcast %284 : f32 to vector<8x32xf32>
    %292 = arith.mulf %291, %274 : vector<8x32xf32>
    %cst_76 = arith.constant 1.000000e+00 : f32
    %293 = arith.subf %cst_76, %284 : f32
    %294 = vector.broadcast %293 : f32 to vector<8x32xf32>
    %295 = arith.mulf %294, %226 : vector<8x32xf32>
    %296 = arith.addf %292, %295 : vector<8x32xf32>
    %c4_i32 = arith.constant 4 : i32
    %c7_i32_77 = arith.constant 7 : i32
    %297 = arith.minsi %c4_i32, %c7_i32_77 : i32
    %c1_i32_78 = arith.constant 1 : i32
    %298 = arith.subi %c4_i32, %c1_i32_78 : i32
    %c0_i32_79 = arith.constant 0 : i32
    %299 = arith.maxsi %298, %c0_i32_79 : i32
    %c8_i32_80 = arith.constant 8 : i32
    %300 = arith.muli %297, %c8_i32_80 : i32
    %301 = tpu.assume_multiple %300, 8 : i32
    %302 = arith.index_cast %301 : i32 to index
    %c0_81 = arith.constant 0 : index
    %303 = vector.load %arg7[%302, %c0_81] : memref<64x128xf32, #tpu.memory_space<vmem>>, vector<8x128xf32>
    %304 = tpu.concatenate %290, %296, %12 in 1 : vector<8x32xf32>, vector<8x32xf32>, vector<8x8xf32> -> vector<8x72xf32>
    %cst_82 = arith.constant dense<0.000000e+00> : vector<8x256xf32>
    %305 = tpu.matmul %304, %7, %cst_82 {dimension_numbers = #tpu.dot_dimension_numbers<[1], [0], [0], [1], [0, 0, 1, 1], [], []>} : vector<8x72xf32>, vector<72x256xf32>, vector<8x256xf32> -> vector<8x256xf32>
    %306 = vector.extract_strided_slice %303 {offsets = [0, 0], sizes = [8, 64], strides = [1, 1]} : vector<8x128xf32> to vector<8x64xf32>
    %307 = vector.extract_strided_slice %305 {offsets = [0, 0], sizes = [8, 64], strides = [1, 1]} : vector<8x256xf32> to vector<8x64xf32>
    %308 = arith.addf %306, %307 : vector<8x64xf32>
    %309 = arith.negf %308 : vector<8x64xf32>
    %310 = math.exp %309 : vector<8x64xf32>
    %cst_83 = arith.constant 1.000000e+00 : f32
    %311 = vector.broadcast %cst_83 : f32 to vector<8x64xf32>
    %312 = arith.addf %311, %310 : vector<8x64xf32>
    %313 = arith.divf %311, %312 : vector<8x64xf32>
    %314 = vector.extract_strided_slice %313 {offsets = [0, 0], sizes = [8, 32], strides = [1, 1]} : vector<8x64xf32> to vector<8x32xf32>
    %315 = vector.extract_strided_slice %313 {offsets = [0, 32], sizes = [8, 32], strides = [1, 1]} : vector<8x64xf32> to vector<8x32xf32>
    %316 = vector.extract_strided_slice %303 {offsets = [0, 64], sizes = [8, 32], strides = [1, 1]} : vector<8x128xf32> to vector<8x32xf32>
    %317 = vector.extract_strided_slice %305 {offsets = [0, 64], sizes = [8, 32], strides = [1, 1]} : vector<8x256xf32> to vector<8x32xf32>
    %318 = arith.mulf %314, %317 : vector<8x32xf32>
    %319 = arith.addf %316, %318 : vector<8x32xf32>
    %320 = math.tanh %319 : vector<8x32xf32>
    %cst_84 = arith.constant 1.000000e+00 : f32
    %321 = vector.broadcast %cst_84 : f32 to vector<8x32xf32>
    %322 = arith.subf %321, %315 : vector<8x32xf32>
    %323 = arith.mulf %322, %320 : vector<8x32xf32>
    %324 = arith.mulf %315, %290 : vector<8x32xf32>
    %325 = arith.addf %323, %324 : vector<8x32xf32>
    %326 = vector.extract_strided_slice %305 {offsets = [0, 128], sizes = [8, 64], strides = [1, 1]} : vector<8x256xf32> to vector<8x64xf32>
    %327 = arith.negf %326 : vector<8x64xf32>
    %328 = math.exp %327 : vector<8x64xf32>
    %cst_85 = arith.constant 1.000000e+00 : f32
    %329 = vector.broadcast %cst_85 : f32 to vector<8x64xf32>
    %330 = arith.addf %329, %328 : vector<8x64xf32>
    %331 = arith.divf %329, %330 : vector<8x64xf32>
    %332 = vector.extract_strided_slice %331 {offsets = [0, 0], sizes = [8, 32], strides = [1, 1]} : vector<8x64xf32> to vector<8x32xf32>
    %333 = vector.extract_strided_slice %331 {offsets = [0, 32], sizes = [8, 32], strides = [1, 1]} : vector<8x64xf32> to vector<8x32xf32>
    %334 = vector.extract_strided_slice %305 {offsets = [0, 224], sizes = [8, 32], strides = [1, 1]} : vector<8x256xf32> to vector<8x32xf32>
    %335 = vector.extract_strided_slice %305 {offsets = [0, 192], sizes = [8, 32], strides = [1, 1]} : vector<8x256xf32> to vector<8x32xf32>
    %336 = arith.subf %335, %334 : vector<8x32xf32>
    %337 = arith.mulf %332, %334 : vector<8x32xf32>
    %338 = arith.addf %336, %337 : vector<8x32xf32>
    %339 = math.tanh %338 : vector<8x32xf32>
    %cst_86 = arith.constant 1.000000e+00 : f32
    %340 = vector.broadcast %cst_86 : f32 to vector<8x32xf32>
    %341 = arith.subf %340, %333 : vector<8x32xf32>
    %342 = arith.mulf %341, %339 : vector<8x32xf32>
    %343 = arith.mulf %333, %296 : vector<8x32xf32>
    %344 = arith.addf %342, %343 : vector<8x32xf32>
    %c8_i32_87 = arith.constant 8 : i32
    %345 = arith.muli %299, %c8_i32_87 : i32
    %346 = tpu.assume_multiple %345, 8 : i32
    %347 = arith.index_cast %346 : i32 to index
    %c0_88 = arith.constant 0 : index
    %348 = vector.load %arg5[%347, %c0_88] : memref<64x32xf32, #tpu.memory_space<vmem>>, vector<8x32xf32>
    tpu.vector_store %arg5[%347, %c0_88], %344 {strides = array<i32>} : memref<64x32xf32, #tpu.memory_space<vmem>>, vector<8x32xf32>,
    %c8_i32_89 = arith.constant 8 : i32
    %349 = arith.cmpi slt, %c4_i32, %c8_i32_89 : i32
    %350 = arith.extui %349 : i1 to i32
    %351 = arith.sitofp %350 : i32 to f32
    %c1_i32_90 = arith.constant 1 : i32
    %352 = arith.cmpi sge, %c4_i32, %c1_i32_90 : i32
    %353 = arith.extui %352 : i1 to i32
    %354 = arith.sitofp %353 : i32 to f32
    %355 = vector.broadcast %351 : f32 to vector<8x32xf32>
    %356 = arith.mulf %355, %325 : vector<8x32xf32>
    %cst_91 = arith.constant 1.000000e+00 : f32
    %357 = arith.subf %cst_91, %351 : f32
    %358 = vector.broadcast %357 : f32 to vector<8x32xf32>
    %359 = arith.mulf %358, %290 : vector<8x32xf32>
    %360 = arith.addf %356, %359 : vector<8x32xf32>
    %361 = vector.broadcast %354 : f32 to vector<8x32xf32>
    %362 = arith.mulf %361, %344 : vector<8x32xf32>
    %cst_92 = arith.constant 1.000000e+00 : f32
    %363 = arith.subf %cst_92, %354 : f32
    %364 = vector.broadcast %363 : f32 to vector<8x32xf32>
    %365 = arith.mulf %364, %296 : vector<8x32xf32>
    %366 = arith.addf %362, %365 : vector<8x32xf32>
    %c5_i32 = arith.constant 5 : i32
    %c7_i32_93 = arith.constant 7 : i32
    %367 = arith.minsi %c5_i32, %c7_i32_93 : i32
    %c1_i32_94 = arith.constant 1 : i32
    %368 = arith.subi %c5_i32, %c1_i32_94 : i32
    %c0_i32_95 = arith.constant 0 : i32
    %369 = arith.maxsi %368, %c0_i32_95 : i32
    %c8_i32_96 = arith.constant 8 : i32
    %370 = arith.muli %367, %c8_i32_96 : i32
    %371 = tpu.assume_multiple %370, 8 : i32
    %372 = arith.index_cast %371 : i32 to index
    %c0_97 = arith.constant 0 : index
    %373 = vector.load %arg7[%372, %c0_97] : memref<64x128xf32, #tpu.memory_space<vmem>>, vector<8x128xf32>
    %374 = tpu.concatenate %360, %366, %12 in 1 : vector<8x32xf32>, vector<8x32xf32>, vector<8x8xf32> -> vector<8x72xf32>
    %cst_98 = arith.constant dense<0.000000e+00> : vector<8x256xf32>
    %375 = tpu.matmul %374, %7, %cst_98 {dimension_numbers = #tpu.dot_dimension_numbers<[1], [0], [0], [1], [0, 0, 1, 1], [], []>} : vector<8x72xf32>, vector<72x256xf32>, vector<8x256xf32> -> vector<8x256xf32>
    %376 = vector.extract_strided_slice %373 {offsets = [0, 0], sizes = [8, 64], strides = [1, 1]} : vector<8x128xf32> to vector<8x64xf32>
    %377 = vector.extract_strided_slice %375 {offsets = [0, 0], sizes = [8, 64], strides = [1, 1]} : vector<8x256xf32> to vector<8x64xf32>
    %378 = arith.addf %376, %377 : vector<8x64xf32>
    %379 = arith.negf %378 : vector<8x64xf32>
    %380 = math.exp %379 : vector<8x64xf32>
    %cst_99 = arith.constant 1.000000e+00 : f32
    %381 = vector.broadcast %cst_99 : f32 to vector<8x64xf32>
    %382 = arith.addf %381, %380 : vector<8x64xf32>
    %383 = arith.divf %381, %382 : vector<8x64xf32>
    %384 = vector.extract_strided_slice %383 {offsets = [0, 0], sizes = [8, 32], strides = [1, 1]} : vector<8x64xf32> to vector<8x32xf32>
    %385 = vector.extract_strided_slice %383 {offsets = [0, 32], sizes = [8, 32], strides = [1, 1]} : vector<8x64xf32> to vector<8x32xf32>
    %386 = vector.extract_strided_slice %373 {offsets = [0, 64], sizes = [8, 32], strides = [1, 1]} : vector<8x128xf32> to vector<8x32xf32>
    %387 = vector.extract_strided_slice %375 {offsets = [0, 64], sizes = [8, 32], strides = [1, 1]} : vector<8x256xf32> to vector<8x32xf32>
    %388 = arith.mulf %384, %387 : vector<8x32xf32>
    %389 = arith.addf %386, %388 : vector<8x32xf32>
    %390 = math.tanh %389 : vector<8x32xf32>
    %cst_100 = arith.constant 1.000000e+00 : f32
    %391 = vector.broadcast %cst_100 : f32 to vector<8x32xf32>
    %392 = arith.subf %391, %385 : vector<8x32xf32>
    %393 = arith.mulf %392, %390 : vector<8x32xf32>
    %394 = arith.mulf %385, %360 : vector<8x32xf32>
    %395 = arith.addf %393, %394 : vector<8x32xf32>
    %396 = vector.extract_strided_slice %375 {offsets = [0, 128], sizes = [8, 64], strides = [1, 1]} : vector<8x256xf32> to vector<8x64xf32>
    %397 = arith.negf %396 : vector<8x64xf32>
    %398 = math.exp %397 : vector<8x64xf32>
    %cst_101 = arith.constant 1.000000e+00 : f32
    %399 = vector.broadcast %cst_101 : f32 to vector<8x64xf32>
    %400 = arith.addf %399, %398 : vector<8x64xf32>
    %401 = arith.divf %399, %400 : vector<8x64xf32>
    %402 = vector.extract_strided_slice %401 {offsets = [0, 0], sizes = [8, 32], strides = [1, 1]} : vector<8x64xf32> to vector<8x32xf32>
    %403 = vector.extract_strided_slice %401 {offsets = [0, 32], sizes = [8, 32], strides = [1, 1]} : vector<8x64xf32> to vector<8x32xf32>
    %404 = vector.extract_strided_slice %375 {offsets = [0, 224], sizes = [8, 32], strides = [1, 1]} : vector<8x256xf32> to vector<8x32xf32>
    %405 = vector.extract_strided_slice %375 {offsets = [0, 192], sizes = [8, 32], strides = [1, 1]} : vector<8x256xf32> to vector<8x32xf32>
    %406 = arith.subf %405, %404 : vector<8x32xf32>
    %407 = arith.mulf %402, %404 : vector<8x32xf32>
    %408 = arith.addf %406, %407 : vector<8x32xf32>
    %409 = math.tanh %408 : vector<8x32xf32>
    %cst_102 = arith.constant 1.000000e+00 : f32
    %410 = vector.broadcast %cst_102 : f32 to vector<8x32xf32>
    %411 = arith.subf %410, %403 : vector<8x32xf32>
    %412 = arith.mulf %411, %409 : vector<8x32xf32>
    %413 = arith.mulf %403, %366 : vector<8x32xf32>
    %414 = arith.addf %412, %413 : vector<8x32xf32>
    %c8_i32_103 = arith.constant 8 : i32
    %415 = arith.muli %369, %c8_i32_103 : i32
    %416 = tpu.assume_multiple %415, 8 : i32
    %417 = arith.index_cast %416 : i32 to index
    %c0_104 = arith.constant 0 : index
    %418 = vector.load %arg5[%417, %c0_104] : memref<64x32xf32, #tpu.memory_space<vmem>>, vector<8x32xf32>
    tpu.vector_store %arg5[%417, %c0_104], %414 {strides = array<i32>} : memref<64x32xf32, #tpu.memory_space<vmem>>, vector<8x32xf32>,
    %c8_i32_105 = arith.constant 8 : i32
    %419 = arith.cmpi slt, %c5_i32, %c8_i32_105 : i32
    %420 = arith.extui %419 : i1 to i32
    %421 = arith.sitofp %420 : i32 to f32
    %c1_i32_106 = arith.constant 1 : i32
    %422 = arith.cmpi sge, %c5_i32, %c1_i32_106 : i32
    %423 = arith.extui %422 : i1 to i32
    %424 = arith.sitofp %423 : i32 to f32
    %425 = vector.broadcast %421 : f32 to vector<8x32xf32>
    %426 = arith.mulf %425, %395 : vector<8x32xf32>
    %cst_107 = arith.constant 1.000000e+00 : f32
    %427 = arith.subf %cst_107, %421 : f32
    %428 = vector.broadcast %427 : f32 to vector<8x32xf32>
    %429 = arith.mulf %428, %360 : vector<8x32xf32>
    %430 = arith.addf %426, %429 : vector<8x32xf32>
    %431 = vector.broadcast %424 : f32 to vector<8x32xf32>
    %432 = arith.mulf %431, %414 : vector<8x32xf32>
    %cst_108 = arith.constant 1.000000e+00 : f32
    %433 = arith.subf %cst_108, %424 : f32
    %434 = vector.broadcast %433 : f32 to vector<8x32xf32>
    %435 = arith.mulf %434, %366 : vector<8x32xf32>
    %436 = arith.addf %432, %435 : vector<8x32xf32>
    %c6_i32 = arith.constant 6 : i32
    %c7_i32_109 = arith.constant 7 : i32
    %437 = arith.minsi %c6_i32, %c7_i32_109 : i32
    %c1_i32_110 = arith.constant 1 : i32
    %438 = arith.subi %c6_i32, %c1_i32_110 : i32
    %c0_i32_111 = arith.constant 0 : i32
    %439 = arith.maxsi %438, %c0_i32_111 : i32
    %c8_i32_112 = arith.constant 8 : i32
    %440 = arith.muli %437, %c8_i32_112 : i32
    %441 = tpu.assume_multiple %440, 8 : i32
    %442 = arith.index_cast %441 : i32 to index
    %c0_113 = arith.constant 0 : index
    %443 = vector.load %arg7[%442, %c0_113] : memref<64x128xf32, #tpu.memory_space<vmem>>, vector<8x128xf32>
    %444 = tpu.concatenate %430, %436, %12 in 1 : vector<8x32xf32>, vector<8x32xf32>, vector<8x8xf32> -> vector<8x72xf32>
    %cst_114 = arith.constant dense<0.000000e+00> : vector<8x256xf32>
    %445 = tpu.matmul %444, %7, %cst_114 {dimension_numbers = #tpu.dot_dimension_numbers<[1], [0], [0], [1], [0, 0, 1, 1], [], []>} : vector<8x72xf32>, vector<72x256xf32>, vector<8x256xf32> -> vector<8x256xf32>
    %446 = vector.extract_strided_slice %443 {offsets = [0, 0], sizes = [8, 64], strides = [1, 1]} : vector<8x128xf32> to vector<8x64xf32>
    %447 = vector.extract_strided_slice %445 {offsets = [0, 0], sizes = [8, 64], strides = [1, 1]} : vector<8x256xf32> to vector<8x64xf32>
    %448 = arith.addf %446, %447 : vector<8x64xf32>
    %449 = arith.negf %448 : vector<8x64xf32>
    %450 = math.exp %449 : vector<8x64xf32>
    %cst_115 = arith.constant 1.000000e+00 : f32
    %451 = vector.broadcast %cst_115 : f32 to vector<8x64xf32>
    %452 = arith.addf %451, %450 : vector<8x64xf32>
    %453 = arith.divf %451, %452 : vector<8x64xf32>
    %454 = vector.extract_strided_slice %453 {offsets = [0, 0], sizes = [8, 32], strides = [1, 1]} : vector<8x64xf32> to vector<8x32xf32>
    %455 = vector.extract_strided_slice %453 {offsets = [0, 32], sizes = [8, 32], strides = [1, 1]} : vector<8x64xf32> to vector<8x32xf32>
    %456 = vector.extract_strided_slice %443 {offsets = [0, 64], sizes = [8, 32], strides = [1, 1]} : vector<8x128xf32> to vector<8x32xf32>
    %457 = vector.extract_strided_slice %445 {offsets = [0, 64], sizes = [8, 32], strides = [1, 1]} : vector<8x256xf32> to vector<8x32xf32>
    %458 = arith.mulf %454, %457 : vector<8x32xf32>
    %459 = arith.addf %456, %458 : vector<8x32xf32>
    %460 = math.tanh %459 : vector<8x32xf32>
    %cst_116 = arith.constant 1.000000e+00 : f32
    %461 = vector.broadcast %cst_116 : f32 to vector<8x32xf32>
    %462 = arith.subf %461, %455 : vector<8x32xf32>
    %463 = arith.mulf %462, %460 : vector<8x32xf32>
    %464 = arith.mulf %455, %430 : vector<8x32xf32>
    %465 = arith.addf %463, %464 : vector<8x32xf32>
    %466 = vector.extract_strided_slice %445 {offsets = [0, 128], sizes = [8, 64], strides = [1, 1]} : vector<8x256xf32> to vector<8x64xf32>
    %467 = arith.negf %466 : vector<8x64xf32>
    %468 = math.exp %467 : vector<8x64xf32>
    %cst_117 = arith.constant 1.000000e+00 : f32
    %469 = vector.broadcast %cst_117 : f32 to vector<8x64xf32>
    %470 = arith.addf %469, %468 : vector<8x64xf32>
    %471 = arith.divf %469, %470 : vector<8x64xf32>
    %472 = vector.extract_strided_slice %471 {offsets = [0, 0], sizes = [8, 32], strides = [1, 1]} : vector<8x64xf32> to vector<8x32xf32>
    %473 = vector.extract_strided_slice %471 {offsets = [0, 32], sizes = [8, 32], strides = [1, 1]} : vector<8x64xf32> to vector<8x32xf32>
    %474 = vector.extract_strided_slice %445 {offsets = [0, 224], sizes = [8, 32], strides = [1, 1]} : vector<8x256xf32> to vector<8x32xf32>
    %475 = vector.extract_strided_slice %445 {offsets = [0, 192], sizes = [8, 32], strides = [1, 1]} : vector<8x256xf32> to vector<8x32xf32>
    %476 = arith.subf %475, %474 : vector<8x32xf32>
    %477 = arith.mulf %472, %474 : vector<8x32xf32>
    %478 = arith.addf %476, %477 : vector<8x32xf32>
    %479 = math.tanh %478 : vector<8x32xf32>
    %cst_118 = arith.constant 1.000000e+00 : f32
    %480 = vector.broadcast %cst_118 : f32 to vector<8x32xf32>
    %481 = arith.subf %480, %473 : vector<8x32xf32>
    %482 = arith.mulf %481, %479 : vector<8x32xf32>
    %483 = arith.mulf %473, %436 : vector<8x32xf32>
    %484 = arith.addf %482, %483 : vector<8x32xf32>
    %c8_i32_119 = arith.constant 8 : i32
    %485 = arith.muli %439, %c8_i32_119 : i32
    %486 = tpu.assume_multiple %485, 8 : i32
    %487 = arith.index_cast %486 : i32 to index
    %c0_120 = arith.constant 0 : index
    %488 = vector.load %arg5[%487, %c0_120] : memref<64x32xf32, #tpu.memory_space<vmem>>, vector<8x32xf32>
    tpu.vector_store %arg5[%487, %c0_120], %484 {strides = array<i32>} : memref<64x32xf32, #tpu.memory_space<vmem>>, vector<8x32xf32>,
    %c8_i32_121 = arith.constant 8 : i32
    %489 = arith.cmpi slt, %c6_i32, %c8_i32_121 : i32
    %490 = arith.extui %489 : i1 to i32
    %491 = arith.sitofp %490 : i32 to f32
    %c1_i32_122 = arith.constant 1 : i32
    %492 = arith.cmpi sge, %c6_i32, %c1_i32_122 : i32
    %493 = arith.extui %492 : i1 to i32
    %494 = arith.sitofp %493 : i32 to f32
    %495 = vector.broadcast %491 : f32 to vector<8x32xf32>
    %496 = arith.mulf %495, %465 : vector<8x32xf32>
    %cst_123 = arith.constant 1.000000e+00 : f32
    %497 = arith.subf %cst_123, %491 : f32
    %498 = vector.broadcast %497 : f32 to vector<8x32xf32>
    %499 = arith.mulf %498, %430 : vector<8x32xf32>
    %500 = arith.addf %496, %499 : vector<8x32xf32>
    %501 = vector.broadcast %494 : f32 to vector<8x32xf32>
    %502 = arith.mulf %501, %484 : vector<8x32xf32>
    %cst_124 = arith.constant 1.000000e+00 : f32
    %503 = arith.subf %cst_124, %494 : f32
    %504 = vector.broadcast %503 : f32 to vector<8x32xf32>
    %505 = arith.mulf %504, %436 : vector<8x32xf32>
    %506 = arith.addf %502, %505 : vector<8x32xf32>
    %c7_i32_125 = arith.constant 7 : i32
    %c7_i32_126 = arith.constant 7 : i32
    %507 = arith.minsi %c7_i32_125, %c7_i32_126 : i32
    %c1_i32_127 = arith.constant 1 : i32
    %508 = arith.subi %c7_i32_125, %c1_i32_127 : i32
    %c0_i32_128 = arith.constant 0 : i32
    %509 = arith.maxsi %508, %c0_i32_128 : i32
    %c8_i32_129 = arith.constant 8 : i32
    %510 = arith.muli %507, %c8_i32_129 : i32
    %511 = tpu.assume_multiple %510, 8 : i32
    %512 = arith.index_cast %511 : i32 to index
    %c0_130 = arith.constant 0 : index
    %513 = vector.load %arg7[%512, %c0_130] : memref<64x128xf32, #tpu.memory_space<vmem>>, vector<8x128xf32>
    %514 = tpu.concatenate %500, %506, %12 in 1 : vector<8x32xf32>, vector<8x32xf32>, vector<8x8xf32> -> vector<8x72xf32>
    %cst_131 = arith.constant dense<0.000000e+00> : vector<8x256xf32>
    %515 = tpu.matmul %514, %7, %cst_131 {dimension_numbers = #tpu.dot_dimension_numbers<[1], [0], [0], [1], [0, 0, 1, 1], [], []>} : vector<8x72xf32>, vector<72x256xf32>, vector<8x256xf32> -> vector<8x256xf32>
    %516 = vector.extract_strided_slice %513 {offsets = [0, 0], sizes = [8, 64], strides = [1, 1]} : vector<8x128xf32> to vector<8x64xf32>
    %517 = vector.extract_strided_slice %515 {offsets = [0, 0], sizes = [8, 64], strides = [1, 1]} : vector<8x256xf32> to vector<8x64xf32>
    %518 = arith.addf %516, %517 : vector<8x64xf32>
    %519 = arith.negf %518 : vector<8x64xf32>
    %520 = math.exp %519 : vector<8x64xf32>
    %cst_132 = arith.constant 1.000000e+00 : f32
    %521 = vector.broadcast %cst_132 : f32 to vector<8x64xf32>
    %522 = arith.addf %521, %520 : vector<8x64xf32>
    %523 = arith.divf %521, %522 : vector<8x64xf32>
    %524 = vector.extract_strided_slice %523 {offsets = [0, 0], sizes = [8, 32], strides = [1, 1]} : vector<8x64xf32> to vector<8x32xf32>
    %525 = vector.extract_strided_slice %523 {offsets = [0, 32], sizes = [8, 32], strides = [1, 1]} : vector<8x64xf32> to vector<8x32xf32>
    %526 = vector.extract_strided_slice %513 {offsets = [0, 64], sizes = [8, 32], strides = [1, 1]} : vector<8x128xf32> to vector<8x32xf32>
    %527 = vector.extract_strided_slice %515 {offsets = [0, 64], sizes = [8, 32], strides = [1, 1]} : vector<8x256xf32> to vector<8x32xf32>
    %528 = arith.mulf %524, %527 : vector<8x32xf32>
    %529 = arith.addf %526, %528 : vector<8x32xf32>
    %530 = math.tanh %529 : vector<8x32xf32>
    %cst_133 = arith.constant 1.000000e+00 : f32
    %531 = vector.broadcast %cst_133 : f32 to vector<8x32xf32>
    %532 = arith.subf %531, %525 : vector<8x32xf32>
    %533 = arith.mulf %532, %530 : vector<8x32xf32>
    %534 = arith.mulf %525, %500 : vector<8x32xf32>
    %535 = arith.addf %533, %534 : vector<8x32xf32>
    %536 = vector.extract_strided_slice %515 {offsets = [0, 128], sizes = [8, 64], strides = [1, 1]} : vector<8x256xf32> to vector<8x64xf32>
    %537 = arith.negf %536 : vector<8x64xf32>
    %538 = math.exp %537 : vector<8x64xf32>
    %cst_134 = arith.constant 1.000000e+00 : f32
    %539 = vector.broadcast %cst_134 : f32 to vector<8x64xf32>
    %540 = arith.addf %539, %538 : vector<8x64xf32>
    %541 = arith.divf %539, %540 : vector<8x64xf32>
    %542 = vector.extract_strided_slice %541 {offsets = [0, 0], sizes = [8, 32], strides = [1, 1]} : vector<8x64xf32> to vector<8x32xf32>
    %543 = vector.extract_strided_slice %541 {offsets = [0, 32], sizes = [8, 32], strides = [1, 1]} : vector<8x64xf32> to vector<8x32xf32>
    %544 = vector.extract_strided_slice %515 {offsets = [0, 224], sizes = [8, 32], strides = [1, 1]} : vector<8x256xf32> to vector<8x32xf32>
    %545 = vector.extract_strided_slice %515 {offsets = [0, 192], sizes = [8, 32], strides = [1, 1]} : vector<8x256xf32> to vector<8x32xf32>
    %546 = arith.subf %545, %544 : vector<8x32xf32>
    %547 = arith.mulf %542, %544 : vector<8x32xf32>
    %548 = arith.addf %546, %547 : vector<8x32xf32>
    %549 = math.tanh %548 : vector<8x32xf32>
    %cst_135 = arith.constant 1.000000e+00 : f32
    %550 = vector.broadcast %cst_135 : f32 to vector<8x32xf32>
    %551 = arith.subf %550, %543 : vector<8x32xf32>
    %552 = arith.mulf %551, %549 : vector<8x32xf32>
    %553 = arith.mulf %543, %506 : vector<8x32xf32>
    %554 = arith.addf %552, %553 : vector<8x32xf32>
    %c8_i32_136 = arith.constant 8 : i32
    %555 = arith.muli %509, %c8_i32_136 : i32
    %556 = tpu.assume_multiple %555, 8 : i32
    %557 = arith.index_cast %556 : i32 to index
    %c0_137 = arith.constant 0 : index
    %558 = vector.load %arg5[%557, %c0_137] : memref<64x32xf32, #tpu.memory_space<vmem>>, vector<8x32xf32>
    tpu.vector_store %arg5[%557, %c0_137], %554 {strides = array<i32>} : memref<64x32xf32, #tpu.memory_space<vmem>>, vector<8x32xf32>,
    %c8_i32_138 = arith.constant 8 : i32
    %559 = arith.cmpi slt, %c7_i32_125, %c8_i32_138 : i32
    %560 = arith.extui %559 : i1 to i32
    %561 = arith.sitofp %560 : i32 to f32
    %c1_i32_139 = arith.constant 1 : i32
    %562 = arith.cmpi sge, %c7_i32_125, %c1_i32_139 : i32
    %563 = arith.extui %562 : i1 to i32
    %564 = arith.sitofp %563 : i32 to f32
    %565 = vector.broadcast %561 : f32 to vector<8x32xf32>
    %566 = arith.mulf %565, %535 : vector<8x32xf32>
    %cst_140 = arith.constant 1.000000e+00 : f32
    %567 = arith.subf %cst_140, %561 : f32
    %568 = vector.broadcast %567 : f32 to vector<8x32xf32>
    %569 = arith.mulf %568, %500 : vector<8x32xf32>
    %570 = arith.addf %566, %569 : vector<8x32xf32>
    %571 = vector.broadcast %564 : f32 to vector<8x32xf32>
    %572 = arith.mulf %571, %554 : vector<8x32xf32>
    %cst_141 = arith.constant 1.000000e+00 : f32
    %573 = arith.subf %cst_141, %564 : f32
    %574 = vector.broadcast %573 : f32 to vector<8x32xf32>
    %575 = arith.mulf %574, %506 : vector<8x32xf32>
    %576 = arith.addf %572, %575 : vector<8x32xf32>
    %c8_i32_142 = arith.constant 8 : i32
    %c7_i32_143 = arith.constant 7 : i32
    %577 = arith.minsi %c8_i32_142, %c7_i32_143 : i32
    %c1_i32_144 = arith.constant 1 : i32
    %578 = arith.subi %c8_i32_142, %c1_i32_144 : i32
    %c0_i32_145 = arith.constant 0 : i32
    %579 = arith.maxsi %578, %c0_i32_145 : i32
    %c8_i32_146 = arith.constant 8 : i32
    %580 = arith.muli %577, %c8_i32_146 : i32
    %581 = tpu.assume_multiple %580, 8 : i32
    %582 = arith.index_cast %581 : i32 to index
    %c0_147 = arith.constant 0 : index
    %583 = vector.load %arg7[%582, %c0_147] : memref<64x128xf32, #tpu.memory_space<vmem>>, vector<8x128xf32>
    %584 = tpu.concatenate %570, %576, %12 in 1 : vector<8x32xf32>, vector<8x32xf32>, vector<8x8xf32> -> vector<8x72xf32>
    %cst_148 = arith.constant dense<0.000000e+00> : vector<8x256xf32>
    %585 = tpu.matmul %584, %7, %cst_148 {dimension_numbers = #tpu.dot_dimension_numbers<[1], [0], [0], [1], [0, 0, 1, 1], [], []>} : vector<8x72xf32>, vector<72x256xf32>, vector<8x256xf32> -> vector<8x256xf32>
    %586 = vector.extract_strided_slice %583 {offsets = [0, 0], sizes = [8, 64], strides = [1, 1]} : vector<8x128xf32> to vector<8x64xf32>
    %587 = vector.extract_strided_slice %585 {offsets = [0, 0], sizes = [8, 64], strides = [1, 1]} : vector<8x256xf32> to vector<8x64xf32>
    %588 = arith.addf %586, %587 : vector<8x64xf32>
    %589 = arith.negf %588 : vector<8x64xf32>
    %590 = math.exp %589 : vector<8x64xf32>
    %cst_149 = arith.constant 1.000000e+00 : f32
    %591 = vector.broadcast %cst_149 : f32 to vector<8x64xf32>
    %592 = arith.addf %591, %590 : vector<8x64xf32>
    %593 = arith.divf %591, %592 : vector<8x64xf32>
    %594 = vector.extract_strided_slice %593 {offsets = [0, 0], sizes = [8, 32], strides = [1, 1]} : vector<8x64xf32> to vector<8x32xf32>
    %595 = vector.extract_strided_slice %593 {offsets = [0, 32], sizes = [8, 32], strides = [1, 1]} : vector<8x64xf32> to vector<8x32xf32>
    %596 = vector.extract_strided_slice %583 {offsets = [0, 64], sizes = [8, 32], strides = [1, 1]} : vector<8x128xf32> to vector<8x32xf32>
    %597 = vector.extract_strided_slice %585 {offsets = [0, 64], sizes = [8, 32], strides = [1, 1]} : vector<8x256xf32> to vector<8x32xf32>
    %598 = arith.mulf %594, %597 : vector<8x32xf32>
    %599 = arith.addf %596, %598 : vector<8x32xf32>
    %600 = math.tanh %599 : vector<8x32xf32>
    %cst_150 = arith.constant 1.000000e+00 : f32
    %601 = vector.broadcast %cst_150 : f32 to vector<8x32xf32>
    %602 = arith.subf %601, %595 : vector<8x32xf32>
    %603 = arith.mulf %602, %600 : vector<8x32xf32>
    %604 = arith.mulf %595, %570 : vector<8x32xf32>
    %605 = arith.addf %603, %604 : vector<8x32xf32>
    %606 = vector.extract_strided_slice %585 {offsets = [0, 128], sizes = [8, 64], strides = [1, 1]} : vector<8x256xf32> to vector<8x64xf32>
    %607 = arith.negf %606 : vector<8x64xf32>
    %608 = math.exp %607 : vector<8x64xf32>
    %cst_151 = arith.constant 1.000000e+00 : f32
    %609 = vector.broadcast %cst_151 : f32 to vector<8x64xf32>
    %610 = arith.addf %609, %608 : vector<8x64xf32>
    %611 = arith.divf %609, %610 : vector<8x64xf32>
    %612 = vector.extract_strided_slice %611 {offsets = [0, 0], sizes = [8, 32], strides = [1, 1]} : vector<8x64xf32> to vector<8x32xf32>
    %613 = vector.extract_strided_slice %611 {offsets = [0, 32], sizes = [8, 32], strides = [1, 1]} : vector<8x64xf32> to vector<8x32xf32>
    %614 = vector.extract_strided_slice %585 {offsets = [0, 224], sizes = [8, 32], strides = [1, 1]} : vector<8x256xf32> to vector<8x32xf32>
    %615 = vector.extract_strided_slice %585 {offsets = [0, 192], sizes = [8, 32], strides = [1, 1]} : vector<8x256xf32> to vector<8x32xf32>
    %616 = arith.subf %615, %614 : vector<8x32xf32>
    %617 = arith.mulf %612, %614 : vector<8x32xf32>
    %618 = arith.addf %616, %617 : vector<8x32xf32>
    %619 = math.tanh %618 : vector<8x32xf32>
    %cst_152 = arith.constant 1.000000e+00 : f32
    %620 = vector.broadcast %cst_152 : f32 to vector<8x32xf32>
    %621 = arith.subf %620, %613 : vector<8x32xf32>
    %622 = arith.mulf %621, %619 : vector<8x32xf32>
    %623 = arith.mulf %613, %576 : vector<8x32xf32>
    %624 = arith.addf %622, %623 : vector<8x32xf32>
    %c8_i32_153 = arith.constant 8 : i32
    %625 = arith.muli %579, %c8_i32_153 : i32
    %626 = tpu.assume_multiple %625, 8 : i32
    %627 = arith.index_cast %626 : i32 to index
    %c0_154 = arith.constant 0 : index
    %628 = vector.load %arg5[%627, %c0_154] : memref<64x32xf32, #tpu.memory_space<vmem>>, vector<8x32xf32>
    tpu.vector_store %arg5[%627, %c0_154], %624 {strides = array<i32>} : memref<64x32xf32, #tpu.memory_space<vmem>>, vector<8x32xf32>,
    %c8_i32_155 = arith.constant 8 : i32
    %629 = arith.cmpi slt, %c8_i32_142, %c8_i32_155 : i32
    %630 = arith.extui %629 : i1 to i32
    %631 = arith.sitofp %630 : i32 to f32
    %c1_i32_156 = arith.constant 1 : i32
    %632 = arith.cmpi sge, %c8_i32_142, %c1_i32_156 : i32
    %633 = arith.extui %632 : i1 to i32
    %634 = arith.sitofp %633 : i32 to f32
    %635 = vector.broadcast %631 : f32 to vector<8x32xf32>
    %636 = arith.mulf %635, %605 : vector<8x32xf32>
    %cst_157 = arith.constant 1.000000e+00 : f32
    %637 = arith.subf %cst_157, %631 : f32
    %638 = vector.broadcast %637 : f32 to vector<8x32xf32>
    %639 = arith.mulf %638, %570 : vector<8x32xf32>
    %640 = arith.addf %636, %639 : vector<8x32xf32>
    %641 = vector.broadcast %634 : f32 to vector<8x32xf32>
    %642 = arith.mulf %641, %624 : vector<8x32xf32>
    %cst_158 = arith.constant 1.000000e+00 : f32
    %643 = arith.subf %cst_158, %634 : f32
    %644 = vector.broadcast %643 : f32 to vector<8x32xf32>
    %645 = arith.mulf %644, %576 : vector<8x32xf32>
    %646 = arith.addf %642, %645 : vector<8x32xf32>
    %c9_i32 = arith.constant 9 : i32
    %c0_159 = arith.constant 0 : index
    %c0_160 = arith.constant 0 : index
    %c0_161 = arith.constant 0 : index
    %647 = vector.load %arg6[%c0_159, %c0_160, %c0_161] : memref<2x8x32xf32, #tpu.memory_space<vmem>>, vector<1x8x32xf32>
    %648 = vector.shape_cast %647 : vector<1x8x32xf32> to vector<8x32xf32>
    %649 = vector.shape_cast %640 : vector<8x32xf32> to vector<1x8x32xf32>
    tpu.vector_store %arg6[%c0_159, %c0_160, %c0_161], %649 {strides = array<i32>} : memref<2x8x32xf32, #tpu.memory_space<vmem>>, vector<1x8x32xf32>,
    %c1_162 = arith.constant 1 : index
    %c0_163 = arith.constant 0 : index
    %c0_164 = arith.constant 0 : index
    %650 = vector.load %arg6[%c1_162, %c0_163, %c0_164] : memref<2x8x32xf32, #tpu.memory_space<vmem>>, vector<1x8x32xf32>
    %651 = vector.shape_cast %650 : vector<1x8x32xf32> to vector<8x32xf32>
    %652 = vector.shape_cast %646 : vector<8x32xf32> to vector<1x8x32xf32>
    tpu.vector_store %arg6[%c1_162, %c0_163, %c0_164], %652 {strides = array<i32>} : memref<2x8x32xf32, #tpu.memory_space<vmem>>, vector<1x8x32xf32>,
    return
  }
}

</mosaic_0001>

<bundles_post_ra>
// kernel: layer_case_forward.1
= control target key start
LH: loop header
LB: loop body
LE: loop exit
PB: predicated region body
PF: predicated region fallthrough
CT: control target
= control target key end

     0   :  { %v128_v0 = vlaneseq  ;;  %s1628_s25 = smov 32   ;;  %v1629_v11 = vmov 0.0   ;;  %s1630_s16 = smov 64   ;;  %vm36_vm1 = vcmask 130048   ;;  %vm145_vm2 = vcmask 261120   ;;  %s2339_s1 = inlined_call_operand.vmem [shape: f32[2,8,32], index: 1, kind: input, shape index: {}]   ;;  %s2340_s4 = inlined_call_operand.vmem [shape: f32[72,256], index: 4, kind: input, shape index: {}]   ;;  %s2341_s3 = inlined_call_operand.vmem [shape: f32[1,128], index: 3, kind: input, shape index: {}]   ;;  %s2342_s2 = inlined_call_operand.vmem [shape: f32[16,128], index: 2, kind: input, shape index: {}]   ;;  %s2343_s0 = inlined_call_operand.vmem [shape: f32[64,16], index: 0, kind: input, shape index: {}]   ;;  %s2344_s5 = inlined_call_operand.vmem [shape: f32[64,32], index: 5, kind: output, shape index: {0}]   ;;  %s2345_s6 = inlined_call_operand.vmem [shape: f32[2,8,32], index: 6, kind: output, shape index: {1}]  }
   0x1   :  { %v1453_v1 = vld [vmem:[%s2339_s1 + $0x8] sm:$0xff]  ;;  %v1673_v2 = vld [vmem:[%s2340_s4 + $0x80] sm:$0xff]  ;;  %v1685_v5 = vld [vmem:[%s2340_s4 + $0x70] sm:$0xff]  ;;  %vm147_vm3 = vcmask 523264   ;;  %vm149_vm4 = vcmask 588800   ;;  %s1631_s23 = smov 96  }
   0x2   :  { %138 = vrot.lane.b32.xlu0 %v1453_v1, %s1628_s25  ;;  %v129_v3 = vand.u32 127, %v128_v0  ;;  %160 = vmatpush.msra.mxu1 %v1673_v2  ;;  %v1680_v4 = vld [vmem:[%s2340_s4 + $0x88] sm:$0xff]  ;;  %v1690_v6 = vld [vmem:[%s2340_s4 + $0x78] sm:$0xff]  ;;  %v1696_v7 = vld [vmem:[%s2340_s4 + $0x60] sm:$0xff] }
   0x3   :  { %180 = vmatpush.msra.mxu2 %v1680_v4  ;;  %309 = vmatpush.msra.mxu3 %v1673_v2  ;;  %v1703_v8 = vld [vmem:[%s2340_s4 + $0x68] sm:$0xff]  ;;  %v1709_v9 = vld [vmem:[%s2340_s4 + $0x50] sm:$0xff]  ;;  %v1716_v10 = vld [vmem:[%s2340_s4 + $0x58] sm:$0xff] }
   0x4   :  { %vm130_vm0 = vcmp.eq.s32.totalorder %v129_v3, 0  ;;  %161 = vmatpush.msra.mxu1 %v1685_v5  ;;  %v1727_v13 = vld [vmem:[%s2340_s4 + $0x40] sm:$0xff]  ;;  %v1732_v14 = vld [vmem:[%s2340_s4 + $0x48] sm:$0xff]  ;;  %v1739_v15 = vld [vmem:[%s2340_s4 + $0x30] sm:$0xff] }
   0x5   :  { %181 = vmatpush.msra.mxu2 %v1690_v6  ;;  %310 = vmatpush.msra.mxu3 %v1685_v5  ;;  %v1452_v12 = vsel %vm130_vm0, 1.0, %v1629_v11  ;;  %v1744_v16 = vld [vmem:[%s2340_s4 + $0x38] sm:$0xff]  ;;  %v31_v17 = vld [vmem:[%s2342_s2 + $0x8] sm:$0xff]  ;;  %v1752_v18 = vld [vmem:[%s2340_s4 + $0x20] sm:$0xff] }
   0x6   :  { %162 = vmatpush.msra.mxu1 %v1696_v7  ;;  %75 = vmatpush.msra.mxu0 %v31_v17  ;;  %v1757_v19 = vld [vmem:[%s2340_s4 + $0x28] sm:$0xff]  ;;  %v30_v20 = vld [vmem:[%s2342_s2] sm:$0xff]  ;;  %v1768_v21 = vld [vmem:[%s2340_s4 + $0x10] sm:$0xff] }
   0x7   :  { %182 = vmatpush.msra.mxu2 %v1703_v8  ;;  %311 = vmatpush.msra.mxu3 %v1696_v7  ;;  %v1773_v22 = vld [vmem:[%s2340_s4 + $0x18] sm:$0xff]  ;;  %v22_v23 = vld [vmem:[%s2343_s0] sm:$0xff]  ;;  %v1794_v25 = vld [vmem:[%s2340_s4 + $0x8] sm:$0xff] }
   0x8   :  { %163 = vmatpush.msra.mxu1 %v1709_v9  ;;  %76 = vmatpush.msra.mxu0 %v30_v20  ;;  %v1789_v24 = vld [vmem:[%s2340_s4] sm:$0xff] }
   0x9   :  { %183 = vmatpush.msra.mxu2 %v1716_v10  ;;  %312 = vmatpush.msra.mxu3 %v1709_v9  ;;  %v1845_v27 = vld [vmem:[%s2339_s1] sm:$0xff] }
   0xa   :  { %142 = vrot.lane.b32.xlu0 %v1452_v12, %s1630_s16  ;;  %164 = vmatpush.msra.mxu1 %v1727_v13  ;;  %v1886_v33 = vld [vmem:[%s2341_s3] ss:$0 sm:$0xff]  ;;  %v283_v11 = vmul.f32 0.0, %v1845_v27 }
   0xb   :  { %184 = vmatpush.msra.mxu2 %v1732_v14  ;;  %313 = vmatpush.msra.mxu3 %v1727_v13 }
   0xc   :  { %165 = vmatpush.msra.mxu1 %v1739_v15  ;;  %754 = vmatpush.msrb.mxu0 %v1680_v4 }
   0xd   :  { %185 = vmatpush.msra.mxu2 %v1744_v16  ;;  %314 = vmatpush.msra.mxu3 %v1739_v15 }
   0xe   :  { %166 = vmatpush.msra.mxu1 %v1752_v18  ;;  %1444 = vmatmul.msk.f32.vlgmr.msra.gmra.mxu0 %vm36_vm1, %v22_v23 }
   0xf   :  { %186 = vmatpush.msra.mxu2 %v1757_v19  ;;  %315 = vmatpush.msra.mxu3 %v1752_v18 }
  0x10   :  { %167 = vmatpush.msra.mxu1 %v1768_v21  ;;  %755 = vmatpush.msrb.mxu0 %v1690_v6 }
  0x11   :  { %187 = vmatpush.msra.mxu2 %v1773_v22  ;;  %316 = vmatpush.msra.mxu3 %v1768_v21 }
  0x12   :  { %168 = vmatpush.msra.mxu1 %v1789_v24  ;;  %756 = vmatpush.msrb.mxu0 %v1703_v8 }
  0x13   :  { %188 = vmatpush.msra.mxu2 %v1794_v25  ;;  %317 = vmatpush.msra.mxu3 %v1789_v24 }
  0x14   :  { %329 = vmatpush.msrb.mxu1 %v1680_v4  ;;  %757 = vmatpush.msrb.mxu0 %v1716_v10 }
  0x15   :  { %450 = vmatpush.msrb.mxu2 %v1673_v2  ;;  %470 = vmatpush.msrb.mxu3 %v1680_v4 }
  0x16   :  { %330 = vmatpush.msrb.mxu1 %v1690_v6  ;;  %758 = vmatpush.msrb.mxu0 %v1732_v14 }
  0x17   :  { %451 = vmatpush.msrb.mxu2 %v1685_v5  ;;  %471 = vmatpush.msrb.mxu3 %v1690_v6 }
  0x18   :  { %331 = vmatpush.msrb.mxu1 %v1703_v8  ;;  %759 = vmatpush.msrb.mxu0 %v1744_v16 }
  0x19   :  { %452 = vmatpush.msrb.mxu2 %v1696_v7  ;;  %472 = vmatpush.msrb.mxu3 %v1703_v8 }
  0x1a   :  { %332 = vmatpush.msrb.mxu1 %v1716_v10  ;;  %760 = vmatpush.msrb.mxu0 %v1757_v19 }
  0x1b   :  { %453 = vmatpush.msrb.mxu2 %v1709_v9  ;;  %473 = vmatpush.msrb.mxu3 %v1716_v10 }
  0x1c   :  { %333 = vmatpush.msrb.mxu1 %v1732_v14  ;;  %761 = vmatpush.msrb.mxu0 %v1773_v22 }
  0x1d   :  { %454 = vmatpush.msrb.mxu2 %v1727_v13  ;;  %474 = vmatpush.msrb.mxu3 %v1732_v14 }
  0x1e   :  { %334 = vmatpush.msrb.mxu1 %v1744_v16  ;;  %762 = vmatpush.msrb.mxu0 %v1794_v25 }
  0x1f   :  { %455 = vmatpush.msrb.mxu2 %v1739_v15  ;;  %475 = vmatpush.msrb.mxu3 %v1744_v16 }
  0x20   :  { %335 = vmatpush.msrb.mxu1 %v1757_v19  ;;  %1038 = vmatpush.msra.mxu0 %v1680_v4 }
  0x21   :  { %456 = vmatpush.msrb.mxu2 %v1752_v18  ;;  %476 = vmatpush.msrb.mxu3 %v1757_v19 }
  0x22   :  { %336 = vmatpush.msrb.mxu1 %v1773_v22  ;;  %1039 = vmatpush.msra.mxu0 %v1690_v6 }
  0x23   :  { %457 = vmatpush.msrb.mxu2 %v1768_v21  ;;  %477 = vmatpush.msrb.mxu3 %v1773_v22 }
  0x24   :  { %337 = vmatpush.msrb.mxu1 %v1794_v25  ;;  %1040 = vmatpush.msra.mxu0 %v1703_v8 }
  0x25   :  { %458 = vmatpush.msrb.mxu2 %v1789_v24  ;;  %478 = vmatpush.msrb.mxu3 %v1794_v25 }
  0x26   :  { %1041 = vmatpush.msra.mxu0 %v1716_v10 }
  0x28   :  { %1042 = vmatpush.msra.mxu0 %v1732_v14 }
  0x2a   :  { %1043 = vmatpush.msra.mxu0 %v1744_v16 }
  0x2c   :  { %1044 = vmatpush.msra.mxu0 %v1757_v19 }
  0x2e   :  { %1045 = vmatpush.msra.mxu0 %v1773_v22 }
  0x30   :  { %1046 = vmatpush.msra.mxu0 %v1794_v25 }
  0x74   :  { %v1837_v26 = vpop.permute.xlu0 %138 }
  0x75   :  { %v146_v28 = vsel %vm145_vm2, %v1845_v27, %v1837_v26 }
  0x7c   :  { %v1851_v29 = vpop.permute.xlu0 %142 }
  0x7d   :  { %v148_v30 = vsel %vm147_vm3, %v146_v28, %v1851_v29 }
  0x7e   :  { %1454 = vmatmul.msk.f32.vlgmr.msra.gmra.mxu1 %vm149_vm4, %v148_v30  ;;  %1455 = vmatmul.msk.f32.vlgmr.msra.gmra.mxu2 %vm149_vm4, %v148_v30 }
  0x7f   :  { %592 = vmatpush.msra.mxu1 %v1673_v2  ;;  %612 = vmatpush.msra.mxu2 %v1680_v4 }
  0x81   :  { %593 = vmatpush.msra.mxu1 %v1685_v5  ;;  %613 = vmatpush.msra.mxu2 %v1690_v6 }
  0x83   :  { %594 = vmatpush.msra.mxu1 %v1696_v7  ;;  %614 = vmatpush.msra.mxu2 %v1703_v8 }
  0x85   :  { %595 = vmatpush.msra.mxu1 %v1709_v9  ;;  %615 = vmatpush.msra.mxu2 %v1716_v10 }
  0x87   :  { %596 = vmatpush.msra.mxu1 %v1727_v13  ;;  %616 = vmatpush.msra.mxu2 %v1732_v14 }
  0x89   :  { %597 = vmatpush.msra.mxu1 %v1739_v15  ;;  %617 = vmatpush.msra.mxu2 %v1744_v16 }
  0x8b   :  { %598 = vmatpush.msra.mxu1 %v1752_v18  ;;  %618 = vmatpush.msra.mxu2 %v1757_v19  ;;  %v78_v34 = vpop.f32.mrf.mxu0 }
  0x8c   :  { %v79_v35 = vadd.f32 %v1886_v33, %v78_v34 }
  0x8d   :  { %599 = vmatpush.msra.mxu1 %v1768_v21  ;;  %619 = vmatpush.msra.mxu2 %v1773_v22 }
  0x8f   :  { %600 = vmatpush.msra.mxu1 %v1789_v24  ;;  %620 = vmatpush.msra.mxu2 %v1794_v25 }
  0xfb   :  { %v170_v31 = vpop.f32.mrf.mxu1 }
  0xfc   :  { %214 = vrot.lane.b32.xlu1 %v170_v31, %s1630_s16  ;;  %v193_v36 = vadd.f32 %v170_v31, %v79_v35 }
  0xfe   :  { %v1456_v37 = vmul.f32 -1.442695, %v193_v36 }
 0x100   :  { %1503 = vpow2.f32 %v1456_v37 }
 0x101   :  { %v1879_v32 = vpop.f32.mrf.mxu2 }
 0x102   :  { %v1457_v38 = vmul.f32 -1.442695, %v1879_v32 }
 0x104   :  { %260 = vrot.lane.b32.xlu1 %v1879_v32, %s1628_s25  ;;  %1505 = vpow2.f32 %v1457_v38 }
 0x106   :  { %v1504_v39 = vpop.eup %1503 }
 0x107   :  { %v197_v40 = vadd.f32 1.0, %v1504_v39 }
 0x109   :  { %1507 = vrcp.f32 %v197_v40  ;;  %v209_v51 = vand.u32 2147483648, %v197_v40  ;;  %vm203_vm6 = vweird.f32 %v197_v40  ;;  %v207_v52 = vand.u32 2147483647, %v197_v40 }
 0x10a   :  { %v1506_v41 = vpop.eup %1505 }
 0x10b   :  { %v239_v42 = vadd.f32 1.0, %v1506_v41  ;;  %v210_v55 = vor.u32 1.1754944e-38, %v209_v51  ;;  %vm208_vm8 = vcmp.eq.f32.partialorder %v207_v52, 8.507059e+37 }
 0x10d   :  { %1509 = vrcp.f32 %v239_v42  ;;  %v251_v60 = vand.u32 2147483648, %v239_v42  ;;  %vm245_vm10 = vweird.f32 %v239_v42  ;;  %v249_v61 = vand.u32 2147483647, %v239_v42 }
 0x10f   :  { %v1508_v43 = vpop.eup %1507  ;;  %v252_v63 = vor.u32 1.1754944e-38, %v251_v60  ;;  %vm250_vm12 = vcmp.eq.f32.partialorder %v249_v61, 8.507059e+37 }
 0x110   :  { %v199_v44 = vmul.f32 %v1508_v43, %v197_v40  ;;  %vm204_vm5 = vweird.f32 %v1508_v43 }
 0x111   :  { %vm205_vm7 = vmor %vm203_vm6, %vm204_vm5 }
 0x112   :  { %v200_v45 = vsub.f32 1.0, %v199_v44 }
 0x113   :  { %v1510_v46 = vpop.eup %1509 }
 0x114   :  { %v201_v47 = vmul.f32 %v1508_v43, %v200_v45  ;;  %v241_v48 = vmul.f32 %v1510_v46, %v239_v42  ;;  %vm246_vm9 = vweird.f32 %v1510_v46 }
 0x115   :  { %vm247_vm11 = vmor %vm245_vm10, %vm246_vm9 }
 0x116   :  { %v202_v49 = vadd.f32 %v1508_v43, %v201_v47  ;;  %v242_v50 = vsub.f32 1.0, %v241_v48 }
 0x118   :  { %v206_v53 = vsel %vm205_vm7, %v1508_v43, %v202_v49  ;;  %v243_v54 = vmul.f32 %v1510_v46, %v242_v50 }
 0x119   :  { %v211_v57 = vsel %vm208_vm8, %v210_v55, %v206_v53 }
 0x11a   :  { %v244_v59 = vadd.f32 %v1510_v46, %v243_v54  ;;  %v224_v37 = vsub.f32 1.0, %v211_v57 }
 0x11c   :  { %v248_v62 = vsel %vm247_vm11, %v1510_v46, %v244_v59 }
 0x11d   :  { %v253_v0 = vsel %vm250_vm12, %v252_v63, %v248_v62 }
 0x11e   :  { %v270_v43 = vsub.f32 1.0, %v253_v0  ;;  %v276_v45 = vmul.f32 %v253_v0, %v1837_v26 }
 0x16e   :  { %v215_v56 = vpop.permute.xlu1 %214 }
 0x16f   :  { %v217_v58 = vmul.f32 %v215_v56, %v211_v57 }
 0x171   :  { %219 = vrot.lane.b32.xlu2 %v217_v58, %s1630_s16 }
 0x176   :  { %v261_v1 = vpop.permute.xlu1 %260 }
 0x177   :  { %v263_v3 = vmul.f32 %v261_v1, %v253_v0 }
 0x179   :  { %265 = vrot.lane.b32.xlu0 %v263_v3, %s1630_s16  ;;  %256 = vrot.lane.b32.xlu2 %v1879_v32, %s1631_s23 }
 0x181   :  { %231 = vrot.lane.b32.xlu2 %v1845_v27, %s1628_s25  ;;  %285 = vrot.lane.b32.xlu0 %v283_v11, %s1628_s25 }
 0x1cb   :  { %v220_v12 = vpop.permute.xlu2 %219 }
 0x1cc   :  { %v222_v17 = vadd.f32 %v220_v12, %v79_v35 }
 0x1ce   :  { %1511 = vtanh.f32 %v222_v17 }
 0x1d3   :  { %v257_v23 = vpop.permute.xlu2 %256 }
 0x1d4   :  { %v1512_v20 = vpop.eup %1511  ;;  %v259_v28 = vsub.f32 %v1879_v32, %v257_v23  ;;  %v23_v32 = vld [vmem:[%s2343_s0 + $0x8] sm:$0xff] }
 0x1d5   :  { %226 = vrot.lane.b32.xlu1 %v1512_v20, %s1631_s23  ;;  %1445 = vmatmul.msk.f32.gmra.mxu0 %vm36_vm1, %v23_v32 }
 0x1db   :  { %v232_v36 = vpop.permute.xlu2 %231 }
 0x1dc   :  { %v234_v38 = vmul.f32 %v232_v36, %v211_v57 }
 0x1eb   :  { %v266_v30 = vpop.permute.xlu0 %265 }
 0x1ec   :  { %v268_v31 = vadd.f32 %v266_v30, %v259_v28 }
 0x1ee   :  { %1513 = vtanh.f32 %v268_v31 }
 0x1f3   :  { %v286_v40 = vpop.permute.xlu0 %285 }
 0x1f4   :  { %v1514_v34 = vpop.eup %1513 }
 0x1f5   :  { %272 = vrot.lane.b32.xlu1 %v1514_v34, %s1631_s23 }
 0x247   :  { %v227_v27 = vpop.permute.xlu1 %226 }
 0x248   :  { %v229_v39 = vmul.f32 %v227_v27, %v224_v37 }
 0x24a   :  { %v235_v35 = vadd.f32 %v234_v38, %v229_v39 }
 0x24c   :  { %v1901_v41 = vadd.f32 %v286_v40, %v235_v35 }
 0x24e   :  { %294 = vrot.lane.b32.xlu2 %v1901_v41, %s1631_s23 }
 0x252   :  { %v81_v53 = vpop.f32.mrf.mxu0 }
 0x253   :  { %v82_v54 = vadd.f32 %v1886_v33, %v81_v53 }
 0x267   :  { %v273_v42 = vpop.permute.xlu1 %272 }
 0x268   :  { %v275_v44 = vmul.f32 %v273_v42, %v270_v43 }
 0x26a   :  { %v1910_v46 = vadd.f32 %v276_v45, %v275_v44 }
 0x26c   :  { %v289_v47 = vmul.f32 0.0, %v1910_v46 }
 0x26e   :  { %v1914_v48 = vadd.f32 %v289_v47, %v1837_v26 }
 0x2a8   :  { %v295_v49 = vpop.permute.xlu2 %294 }
 0x2a9   :  { %v297_v50 = vsel %vm145_vm2, %v295_v49, %v1914_v48 }
 0x2aa   :  { %v298_v51 = vsel %vm147_vm3, %v297_v50, %v1851_v29 }
 0x2ab   :  { %1458 = vmatmul.msk.f32.vlgmr.msra.gmra.mxu3 %vm149_vm4, %v298_v51  ;;  %1459 = vmatmul.msk.f32.vlgmr.msrb.gmra.mxu1 %vm149_vm4, %v298_v51 }
 0x2ac   :  { %734 = vmatpush.msra.mxu3 %v1673_v2  ;;  %876 = vmatpush.msrb.mxu1 %v1673_v2 }
 0x2ae   :  { %735 = vmatpush.msra.mxu3 %v1685_v5  ;;  %877 = vmatpush.msrb.mxu1 %v1685_v5 }
 0x2b0   :  { %736 = vmatpush.msra.mxu3 %v1696_v7  ;;  %878 = vmatpush.msrb.mxu1 %v1696_v7 }
 0x2b2   :  { %737 = vmatpush.msra.mxu3 %v1709_v9  ;;  %879 = vmatpush.msrb.mxu1 %v1709_v9 }
 0x2b4   :  { %738 = vmatpush.msra.mxu3 %v1727_v13  ;;  %880 = vmatpush.msrb.mxu1 %v1727_v13 }
 0x2b6   :  { %739 = vmatpush.msra.mxu3 %v1739_v15  ;;  %881 = vmatpush.msrb.mxu1 %v1739_v15 }
 0x2b8   :  { %740 = vmatpush.msra.mxu3 %v1752_v18  ;;  %882 = vmatpush.msrb.mxu1 %v1752_v18 }
 0x2ba   :  { %741 = vmatpush.msra.mxu3 %v1768_v21  ;;  %883 = vmatpush.msrb.mxu1 %v1768_v21 }
 0x2bc   :  { %742 = vmatpush.msra.mxu3 %v1789_v24  ;;  %884 = vmatpush.msrb.mxu1 %v1789_v24 }
 0x328   :  { %v339_v26 = vpop.f32.mrf.mxu1 }
 0x329   :  { %405 = vrot.lane.b32.xlu1 %v339_v26, %s1628_s25  ;;  %v1461_v55 = vmul.f32 -1.442695, %v339_v26 }
 0x32b   :  { %1515 = vpow2.f32 %v1461_v55 }
 0x32e   :  { %v319_v52 = vpop.f32.mrf.mxu3 }
 0x32f   :  { %363 = vrot.lane.b32.xlu0 %v319_v52, %s1630_s16  ;;  %v342_v56 = vadd.f32 %v319_v52, %v82_v54 }
 0x331   :  { %v1460_v57 = vmul.f32 -1.442695, %v342_v56  ;;  %v1516_v58 = vpop.eup %1515 }
 0x332   :  { %v384_v59 = vadd.f32 1.0, %v1516_v58 }
 0x333   :  { %1517 = vpow2.f32 %v1460_v57 }
 0x334   :  { %1519 = vrcp.f32 %v384_v59  ;;  %v396_v20 = vand.u32 2147483648, %v384_v59  ;;  %vm390_vm14 = vweird.f32 %v384_v59  ;;  %v394_v23 = vand.u32 2147483647, %v384_v59 }
 0x336   :  { %v397_v31 = vor.u32 1.1754944e-38, %v396_v20  ;;  %vm395_vm0 = vcmp.eq.f32.partialorder %v394_v23, 8.507059e+37 }
 0x337   :  { %401 = vrot.lane.b32.xlu0 %v339_v26, %s1631_s23 }
 0x339   :  { %v1518_v60 = vpop.eup %1517 }
 0x33a   :  { %v346_v61 = vadd.f32 1.0, %v1518_v60  ;;  %v1520_v62 = vpop.eup %1519 }
 0x33b   :  { %v386_v63 = vmul.f32 %v1520_v62, %v384_v59  ;;  %vm391_vm13 = vweird.f32 %v1520_v62  ;;  %v428_v59 = vmul.f32 0.0, %v1901_v41 }
 0x33c   :  { %1521 = vrcp.f32 %v346_v61  ;;  %vm392_vm15 = vmor %vm390_vm14, %vm391_vm13  ;;  %v358_v27 = vand.u32 2147483648, %v346_v61  ;;  %vm352_vm6 = vweird.f32 %v346_v61  ;;  %v356_v39 = vand.u32 2147483647, %v346_v61 }
 0x33d   :  { %v387_v1 = vsub.f32 1.0, %v386_v63 }
 0x33e   :  { %v359_v35 = vor.u32 1.1754944e-38, %v358_v27  ;;  %vm357_vm8 = vcmp.eq.f32.partialorder %v356_v39, 8.507059e+37 }
 0x33f   :  { %v388_v11 = vmul.f32 %v1520_v62, %v387_v1 }
 0x341   :  { %v389_v17 = vadd.f32 %v1520_v62, %v388_v11 }
 0x342   :  { %v1522_v0 = vpop.eup %1521 }
 0x343   :  { %v348_v3 = vmul.f32 %v1522_v0, %v346_v61  ;;  %v393_v30 = vsel %vm392_vm15, %v1520_v62, %v389_v17  ;;  %vm353_vm5 = vweird.f32 %v1522_v0 }
 0x344   :  { %v398_v37 = vsel %vm395_vm0, %v397_v31, %v393_v30  ;;  %vm354_vm7 = vmor %vm352_vm6, %vm353_vm5 }
 0x345   :  { %v349_v12 = vsub.f32 1.0, %v348_v3  ;;  %v415_v62 = vsub.f32 1.0, %v398_v37 }
 0x347   :  { %v350_v28 = vmul.f32 %v1522_v0, %v349_v12 }
 0x349   :  { %v351_v34 = vadd.f32 %v1522_v0, %v350_v28 }
 0x34b   :  { %v355_v40 = vsel %vm354_vm7, %v1522_v0, %v351_v34  ;;  %v421_v0 = vmul.f32 %v398_v37, %v1914_v48 }
 0x34c   :  { %v360_v42 = vsel %vm357_vm8, %v359_v35, %v355_v40 }
 0x34d   :  { %v373_v55 = vsub.f32 1.0, %v360_v42  ;;  %v379_v57 = vmul.f32 %v360_v42, %v1901_v41  ;;  %v430_v41 = vmul.f32 0.0, %v1914_v48 }
 0x39b   :  { %v406_v36 = vpop.permute.xlu1 %405 }
 0x39c   :  { %v408_v38 = vmul.f32 %v406_v36, %v398_v37 }
 0x39e   :  { %410 = vrot.lane.b32.xlu1 %v408_v38, %s1630_s16 }
 0x3a1   :  { %v364_v32 = vpop.permute.xlu0 %363 }
 0x3a2   :  { %v366_v43 = vmul.f32 %v364_v32, %v360_v42 }
 0x3a4   :  { %368 = vrot.lane.b32.xlu2 %v366_v43, %s1630_s16 }
 0x3a9   :  { %v402_v49 = vpop.permute.xlu0 %401 }
 0x3aa   :  { %v404_v50 = vsub.f32 %v339_v26, %v402_v49  ;;  %v24_v26 = vld [vmem:[%s2343_s0 + $0x10] sm:$0xff] }
 0x3ab   :  { %1446 = vmatmul.msk.f32.gmra.mxu0 %vm36_vm1, %v24_v26 }
 0x3fe   :  { %v369_v44 = vpop.permute.xlu2 %368 }
 0x3ff   :  { %v371_v45 = vadd.f32 %v369_v44, %v82_v54 }
 0x401   :  { %1523 = vtanh.f32 %v371_v45 }
 0x407   :  { %v1524_v47 = vpop.eup %1523 }
 0x408   :  { %375 = vrot.lane.b32.xlu2 %v1524_v47, %s1631_s23 }
 0x410   :  { %v411_v51 = vpop.permute.xlu1 %410 }
 0x411   :  { %v413_v52 = vadd.f32 %v411_v51, %v404_v50 }
 0x413   :  { %1525 = vtanh.f32 %v413_v52 }
 0x419   :  { %v1526_v53 = vpop.eup %1525 }
 0x41a   :  { %417 = vrot.lane.b32.xlu0 %v1526_v53, %s1631_s23 }
 0x428   :  { %v84_v23 = vpop.f32.mrf.mxu0 }
 0x429   :  { %v85_v28 = vadd.f32 %v1886_v33, %v84_v23 }
 0x462   :  { %v376_v56 = vpop.permute.xlu2 %375 }
 0x463   :  { %v378_v58 = vmul.f32 %v376_v56, %v373_v55 }
 0x465   :  { %v380_v54 = vadd.f32 %v379_v57, %v378_v58 }
 0x467   :  { %v1950_v60 = vadd.f32 %v428_v59, %v380_v54 }
 0x469   :  { %435 = vrot.lane.b32.xlu1 %v1950_v60, %s1631_s23 }
 0x48c   :  { %v418_v61 = vpop.permute.xlu0 %417 }
 0x48d   :  { %v420_v63 = vmul.f32 %v418_v61, %v415_v62 }
 0x48f   :  { %v1959_v1 = vadd.f32 %v421_v0, %v420_v63 }
 0x491   :  { %v1963_v3 = vadd.f32 %v430_v41, %v1959_v1 }
 0x4db   :  { %v436_v11 = vpop.permute.xlu1 %435 }
 0x4dc   :  { %v438_v12 = vsel %vm145_vm2, %v436_v11, %v1963_v3 }
 0x4dd   :  { %v439_v17 = vsel %vm147_vm3, %v438_v12, %v1851_v29 }
 0x4de   :  { %1462 = vmatmul.msk.f32.vlgmr.msrb.gmra.mxu2 %vm149_vm4, %v439_v17  ;;  %1463 = vmatmul.msk.f32.vlgmr.msrb.gmra.mxu3 %vm149_vm4, %v439_v17 }
 0x4df   :  { %896 = vmatpush.msrb.mxu2 %v1680_v4  ;;  %1018 = vmatpush.msrb.mxu3 %v1673_v2 }
 0x4e1   :  { %897 = vmatpush.msrb.mxu2 %v1690_v6  ;;  %1019 = vmatpush.msrb.mxu3 %v1685_v5 }
 0x4e3   :  { %898 = vmatpush.msrb.mxu2 %v1703_v8  ;;  %1020 = vmatpush.msrb.mxu3 %v1696_v7 }
 0x4e5   :  { %899 = vmatpush.msrb.mxu2 %v1716_v10  ;;  %1021 = vmatpush.msrb.mxu3 %v1709_v9 }
 0x4e7   :  { %900 = vmatpush.msrb.mxu2 %v1732_v14  ;;  %1022 = vmatpush.msrb.mxu3 %v1727_v13 }
 0x4e9   :  { %901 = vmatpush.msrb.mxu2 %v1744_v16  ;;  %1023 = vmatpush.msrb.mxu3 %v1739_v15 }
 0x4eb   :  { %902 = vmatpush.msrb.mxu2 %v1757_v19  ;;  %1024 = vmatpush.msrb.mxu3 %v1752_v18 }
 0x4ed   :  { %903 = vmatpush.msrb.mxu2 %v1773_v22  ;;  %1025 = vmatpush.msrb.mxu3 %v1768_v21 }
 0x4ef   :  { %904 = vmatpush.msrb.mxu2 %v1794_v25  ;;  %1026 = vmatpush.msrb.mxu3 %v1789_v24 }
 0x561   :  { %v460_v48 = vpop.f32.mrf.mxu2  ;;  %v480_v20 = vpop.f32.mrf.mxu3 }
 0x562   :  { %546 = vrot.lane.b32.xlu0 %v480_v20, %s1628_s25  ;;  %504 = vrot.lane.b32.xlu2 %v460_v48, %s1630_s16  ;;  %v483_v30 = vadd.f32 %v460_v48, %v85_v28  ;;  %v1465_v27 = vmul.f32 -1.442695, %v480_v20 }
 0x564   :  { %v1464_v31 = vmul.f32 -1.442695, %v483_v30 }
 0x566   :  { %1527 = vpow2.f32 %v1464_v31 }
 0x56a   :  { %542 = vrot.lane.b32.xlu2 %v480_v20, %s1631_s23 }
 0x56c   :  { %v1528_v34 = vpop.eup %1527 }
 0x56d   :  { %v487_v36 = vadd.f32 1.0, %v1528_v34 }
 0x56f   :  { %1529 = vrcp.f32 %v487_v36  ;;  %v499_v43 = vand.u32 2147483648, %v487_v36  ;;  %vm493_vm10 = vweird.f32 %v487_v36  ;;  %v497_v44 = vand.u32 2147483647, %v487_v36 }
 0x570   :  { %1531 = vpow2.f32 %v1465_v27 }
 0x571   :  { %v500_v47 = vor.u32 1.1754944e-38, %v499_v43  ;;  %vm498_vm12 = vcmp.eq.f32.partialorder %v497_v44, 8.507059e+37 }
 0x575   :  { %v1530_v37 = vpop.eup %1529 }
 0x576   :  { %v489_v38 = vmul.f32 %v1530_v37, %v487_v36  ;;  %v1532_v40 = vpop.eup %1531  ;;  %vm494_vm9 = vweird.f32 %v1530_v37 }
 0x577   :  { %v525_v32 = vadd.f32 1.0, %v1532_v40  ;;  %vm495_vm11 = vmor %vm493_vm10, %vm494_vm9 }
 0x578   :  { %v490_v39 = vsub.f32 1.0, %v489_v38 }
 0x579   :  { %1533 = vrcp.f32 %v525_v32  ;;  %v537_v58 = vand.u32 2147483648, %v525_v32  ;;  %vm531_vm14 = vweird.f32 %v525_v32  ;;  %v535_v59 = vand.u32 2147483647, %v525_v32 }
 0x57a   :  { %v491_v35 = vmul.f32 %v1530_v37, %v490_v39 }
 0x57b   :  { %v538_v26 = vor.u32 1.1754944e-38, %v537_v58  ;;  %vm536_vm0 = vcmp.eq.f32.partialorder %v535_v59, 8.507059e+37 }
 0x57c   :  { %v492_v42 = vadd.f32 %v1530_v37, %v491_v35 }
 0x57e   :  { %v496_v45 = vsel %vm495_vm11, %v1530_v37, %v492_v42 }
 0x57f   :  { %v501_v50 = vsel %vm498_vm12, %v500_v47, %v496_v45  ;;  %v1534_v52 = vpop.eup %1533 }
 0x580   :  { %v527_v53 = vmul.f32 %v1534_v52, %v525_v32  ;;  %vm532_vm13 = vweird.f32 %v1534_v52  ;;  %v514_v31 = vsub.f32 1.0, %v501_v50  ;;  %v520_v36 = vmul.f32 %v501_v50, %v1950_v60 }
 0x581   :  { %vm533_vm15 = vmor %vm531_vm14, %vm532_vm13 }
 0x582   :  { %v528_v55 = vsub.f32 1.0, %v527_v53 }
 0x584   :  { %v529_v56 = vmul.f32 %v1534_v52, %v528_v55 }
 0x586   :  { %v530_v57 = vadd.f32 %v1534_v52, %v529_v56 }
 0x588   :  { %v534_v54 = vsel %vm533_vm15, %v1534_v52, %v530_v57 }
 0x589   :  { %v539_v62 = vsel %vm536_vm0, %v538_v26, %v534_v54 }
 0x58a   :  { %v556_v40 = vsub.f32 1.0, %v539_v62  ;;  %v562_v32 = vmul.f32 %v539_v62, %v1963_v3 }
 0x5bc   :  { %v505_v49 = vpop.permute.xlu2 %504 }
 0x5bd   :  { %v507_v51 = vmul.f32 %v505_v49, %v501_v50 }
 0x5bf   :  { %509 = vrot.lane.b32.xlu1 %v507_v51, %s1630_s16 }
 0x5c4   :  { %v543_v12 = vpop.permute.xlu2 %542 }
 0x5c5   :  { %v545_v17 = vsub.f32 %v480_v20, %v543_v12  ;;  %v25_v20 = vld [vmem:[%s2343_s0 + $0x18] sm:$0xff] }
 0x5c6   :  { %1447 = vmatmul.msk.f32.gmra.mxu0 %vm36_vm1, %v25_v20  ;;  %v29_v20 = vld [vmem:[%s2343_s0 + $0x38] sm:$0xff] }
 0x5d4   :  { %v547_v61 = vpop.permute.xlu0 %546 }
 0x5d5   :  { %v549_v63 = vmul.f32 %v547_v61, %v539_v62 }
 0x5d7   :  { %551 = vrot.lane.b32.xlu0 %v549_v63, %s1630_s16 }
 0x631   :  { %v510_v0 = vpop.permute.xlu1 %509 }
 0x632   :  { %v512_v41 = vadd.f32 %v510_v0, %v85_v28  ;;  %v570_v28 = vmul.f32 0.0, %v1950_v60  ;;  %v572_v60 = vmul.f32 0.0, %v1963_v3 }
 0x634   :  { %1535 = vtanh.f32 %v512_v41 }
 0x63a   :  { %v1536_v11 = vpop.eup %1535 }
 0x63b   :  { %516 = vrot.lane.b32.xlu1 %v1536_v11, %s1631_s23 }
 0x649   :  { %v552_v48 = vpop.permute.xlu0 %551 }
 0x64a   :  { %v554_v23 = vadd.f32 %v552_v48, %v545_v17 }
 0x64c   :  { %1537 = vtanh.f32 %v554_v23 }
 0x652   :  { %v1538_v30 = vpop.eup %1537 }
 0x653   :  { %558 = vrot.lane.b32.xlu2 %v1538_v30, %s1631_s23 }
 0x6ad   :  { %v517_v34 = vpop.permute.xlu1 %516  ;;  %v559_v39 = vpop.permute.xlu2 %558 }
 0x6ae   :  { %v519_v37 = vmul.f32 %v517_v34, %v514_v31  ;;  %v561_v35 = vmul.f32 %v559_v39, %v556_v40 }
 0x6b0   :  { %v521_v27 = vadd.f32 %v520_v36, %v519_v37  ;;  %v2008_v42 = vadd.f32 %v562_v32, %v561_v35  ;;  %v26_v37 = vld [vmem:[%s2343_s0 + $0x20] sm:$0xff] }
 0x6b1   :  { %1448 = vmatmul.msk.f32.gmra.mxu0 %vm36_vm1, %v26_v37 }
 0x6b2   :  { %v1999_v38 = vadd.f32 %v570_v28, %v521_v27  ;;  %v2012_v43 = vadd.f32 %v572_v60, %v2008_v42  ;;  %v27_v27 = vld [vmem:[%s2343_s0 + $0x28] sm:$0xff]  ;;  %v28_v28 = vld [vmem:[%s2343_s0 + $0x30] sm:$0xff] }
 0x6b4   :  { %577 = vrot.lane.b32.xlu0 %v1999_v38, %s1631_s23 }
 0x6b9   :  { %1449 = vmatmul.msk.f32.gmra.mxu0 %vm36_vm1, %v27_v27 }
 0x6c1   :  { %1450 = vmatmul.msk.f32.gmra.mxu0 %vm36_vm1, %v28_v28 }
 0x6c9   :  { %1451 = vmatmul.msk.f32.gmra.mxu0 %vm36_vm1, %v29_v20 }
 0x726   :  { %v578_v44 = vpop.permute.xlu0 %577 }
 0x727   :  { %v580_v45 = vsel %vm145_vm2, %v578_v44, %v2012_v43  ;;  %v712_v44 = vmul.f32 0.0, %v1999_v38 }
 0x728   :  { %v581_v47 = vsel %vm147_vm3, %v580_v45, %v1851_v29 }
 0x729   :  { %1467 = vmatmul.msk.f32.vlgmr.msra.gmra.mxu1 %vm149_vm4, %v581_v47  ;;  %1468 = vmatmul.msk.f32.vlgmr.msra.gmra.mxu2 %vm149_vm4, %v581_v47 }
 0x72a   :  { %1160 = vmatpush.msra.mxu1 %v1673_v2  ;;  %1180 = vmatpush.msra.mxu2 %v1680_v4 }
 0x72c   :  { %1161 = vmatpush.msra.mxu1 %v1685_v5  ;;  %1181 = vmatpush.msra.mxu2 %v1690_v6  ;;  %v87_v6 = vpop.f32.mrf.mxu0 }
 0x72e   :  { %1162 = vmatpush.msra.mxu1 %v1696_v7  ;;  %1182 = vmatpush.msra.mxu2 %v1703_v8  ;;  %v88_v8 = vadd.f32 %v1886_v33, %v87_v6 }
 0x730   :  { %1163 = vmatpush.msra.mxu1 %v1709_v9  ;;  %1183 = vmatpush.msra.mxu2 %v1716_v10 }
 0x732   :  { %1164 = vmatpush.msra.mxu1 %v1727_v13  ;;  %1184 = vmatpush.msra.mxu2 %v1732_v14 }
 0x734   :  { %1165 = vmatpush.msra.mxu1 %v1739_v15  ;;  %1185 = vmatpush.msra.mxu2 %v1744_v16 }
 0x736   :  { %1166 = vmatpush.msra.mxu1 %v1752_v18  ;;  %1186 = vmatpush.msra.mxu2 %v1757_v19 }
 0x738   :  { %1167 = vmatpush.msra.mxu1 %v1768_v21  ;;  %1187 = vmatpush.msra.mxu2 %v1773_v22 }
 0x73a   :  { %1168 = vmatpush.msra.mxu1 %v1789_v24  ;;  %1188 = vmatpush.msra.mxu2 %v1794_v25 }
 0x7a6   :  { %v602_v2 = vpop.f32.mrf.mxu1 }
 0x7a7   :  { %646 = vrot.lane.b32.xlu1 %v602_v2, %s1630_s16  ;;  %v625_v10 = vadd.f32 %v602_v2, %v88_v8 }
 0x7a9   :  { %v1469_v13 = vmul.f32 -1.442695, %v625_v10 }
 0x7ac   :  { %v622_v4 = vpop.f32.mrf.mxu2 }
 0x7ad   :  { %688 = vrot.lane.b32.xlu2 %v622_v4, %s1628_s25  ;;  %v1470_v5 = vmul.f32 -1.442695, %v622_v4 }
 0x7af   :  { %684 = vrot.lane.b32.xlu1 %v622_v4, %s1631_s23  ;;  %1539 = vpow2.f32 %v1470_v5 }
 0x7b5   :  { %v1540_v7 = vpop.eup %1539 }
 0x7b6   :  { %v667_v9 = vadd.f32 1.0, %v1540_v7  ;;  %v714_v7 = vmul.f32 0.0, %v2012_v43 }
 0x7b8   :  { %1541 = vrcp.f32 %v667_v9  ;;  %v679_v3 = vand.u32 2147483648, %v667_v9  ;;  %vm673_vm6 = vweird.f32 %v667_v9  ;;  %v677_v49 = vand.u32 2147483647, %v667_v9 }
 0x7b9   :  { %1543 = vpow2.f32 %v1469_v13  ;;  %v1611_v13 = vld [vmem:[%s2340_s4 + $0x80] sm:$0xff] }
 0x7ba   :  { %v680_v52 = vor.u32 1.1754944e-38, %v679_v3  ;;  %vm678_vm8 = vcmp.eq.f32.partialorder %v677_v49, 8.507059e+37  ;;  %v1620_v3 = vld [vmem:[%s2340_s4 + $0x48] sm:$0xff]  ;;  %v1621_v49 = vld [vmem:[%s2340_s4 + $0x30] sm:$0xff] }
 0x7be   :  { %v1542_v14 = vpop.eup %1541 }
 0x7bf   :  { %v669_v15 = vmul.f32 %v1542_v14, %v667_v9  ;;  %v1544_v16 = vpop.eup %1543  ;;  %vm674_vm5 = vweird.f32 %v1542_v14 }
 0x7c0   :  { %v629_v19 = vadd.f32 1.0, %v1544_v16  ;;  %vm675_vm7 = vmor %vm673_vm6, %vm674_vm5  ;;  %v1615_v16 = vld [vmem:[%s2340_s4 + $0x60] sm:$0xff] }
 0x7c1   :  { %v670_v18 = vsub.f32 1.0, %v669_v15  ;;  %v1614_v15 = vld [vmem:[%s2340_s4 + $0x78] sm:$0xff] }
 0x7c2   :  { %1545 = vrcp.f32 %v629_v19  ;;  %v641_v26 = vand.u32 2147483648, %v629_v19  ;;  %vm635_vm10 = vweird.f32 %v629_v19  ;;  %v639_v61 = vand.u32 2147483647, %v629_v19 }
 0x7c3   :  { %v671_v21 = vmul.f32 %v1542_v14, %v670_v18  ;;  %v1616_v18 = vld [vmem:[%s2340_s4 + $0x68] sm:$0xff] }
 0x7c4   :  { %v642_v63 = vor.u32 1.1754944e-38, %v641_v26  ;;  %vm640_vm12 = vcmp.eq.f32.partialorder %v639_v61, 8.507059e+37 }
 0x7c5   :  { %v672_v22 = vadd.f32 %v1542_v14, %v671_v21  ;;  %v1618_v21 = vld [vmem:[%s2340_s4 + $0x58] sm:$0xff] }
 0x7c7   :  { %v676_v51 = vsel %vm675_vm7, %v1542_v14, %v672_v22  ;;  %v1613_v14 = vld [vmem:[%s2340_s4 + $0x70] sm:$0xff]  ;;  %v1619_v22 = vld [vmem:[%s2340_s4 + $0x40] sm:$0xff] }
 0x7c8   :  { %v1546_v50 = vpop.eup %1545  ;;  %v681_v56 = vsel %vm678_vm8, %v680_v52, %v676_v51  ;;  %v1623_v51 = vld [vmem:[%s2340_s4 + $0x20] sm:$0xff]  ;;  %v1624_v52 = vld [vmem:[%s2340_s4 + $0x28] sm:$0xff] }
 0x7c9   :  { %v631_v53 = vmul.f32 %v1546_v50, %v629_v19  ;;  %vm636_vm9 = vweird.f32 %v1546_v50  ;;  %v698_v2 = vsub.f32 1.0, %v681_v56  ;;  %v704_v5 = vmul.f32 %v681_v56, %v2012_v43  ;;  %v1612_v43 = vld [vmem:[%s2340_s4 + $0x88] sm:$0xff]  ;;  %v1617_v19 = vld [vmem:[%s2340_s4 + $0x50] sm:$0xff] }
 0x7ca   :  { %vm637_vm11 = vmor %vm635_vm10, %vm636_vm9 }
 0x7cb   :  { %v632_v58 = vsub.f32 1.0, %v631_v53  ;;  %v1625_v53 = vld [vmem:[%s2340_s4 + $0x10] sm:$0xff] }
 0x7cd   :  { %v633_v59 = vmul.f32 %v1546_v50, %v632_v58 }
 0x7cf   :  { %v634_v54 = vadd.f32 %v1546_v50, %v633_v59 }
 0x7d1   :  { %v638_v62 = vsel %vm637_vm11, %v1546_v50, %v634_v54  ;;  %v1622_v50 = vld [vmem:[%s2340_s4 + $0x38] sm:$0xff] }
 0x7d2   :  { %v643_v41 = vsel %vm640_vm12, %v642_v63, %v638_v62 }
 0x7d3   :  { %v656_v39 = vsub.f32 1.0, %v643_v41  ;;  %v662_v35 = vmul.f32 %v643_v41, %v1999_v38 }
 0x807   :  { %v689_v55 = vpop.permute.xlu2 %688 }
 0x808   :  { %v691_v57 = vmul.f32 %v689_v55, %v681_v56  ;;  %v1626_v55 = vld [vmem:[%s2340_s4 + $0x18] sm:$0xff]  ;;  %v90_v56 = vpop.f32.mrf.mxu0 }
 0x809   :  { %v91_v61 = vadd.f32 %v1886_v33, %v90_v56 }
 0x80a   :  { %693 = vrot.lane.b32.xlu2 %v691_v57, %s1630_s16 }
 0x810   :  { %v2131_v57 = vpop.f32.mrf.mxu0 }
 0x818   :  { %v2133_v58 = vpop.f32.mrf.mxu0 }
 0x819   :  { %v647_v0 = vpop.permute.xlu1 %646 }
 0x81a   :  { %v649_v11 = vmul.f32 %v647_v0, %v643_v41 }
 0x81c   :  { %651 = vrot.lane.b32.xlu0 %v649_v11, %s1630_s16 }
 0x820   :  { %v2135_v59 = vpop.f32.mrf.mxu0 }
 0x821   :  { %v685_v12 = vpop.permute.xlu1 %684 }
 0x822   :  { %v687_v17 = vsub.f32 %v622_v4, %v685_v12 }
 0x864   :  { %v694_v48 = vpop.permute.xlu2 %693 }
 0x865   :  { %v696_v23 = vadd.f32 %v694_v48, %v687_v17 }
 0x867   :  { %1547 = vtanh.f32 %v696_v23 }
 0x86d   :  { %v1548_v30 = vpop.eup %1547 }
 0x86e   :  { %700 = vrot.lane.b32.xlu1 %v1548_v30, %s1631_s23 }
 0x88e   :  { %v652_v31 = vpop.permute.xlu0 %651 }
 0x88f   :  { %v654_v34 = vadd.f32 %v652_v31, %v88_v8 }
 0x891   :  { %1549 = vtanh.f32 %v654_v34 }
 0x897   :  { %v1550_v36 = vpop.eup %1549 }
 0x898   :  { %658 = vrot.lane.b32.xlu0 %v1550_v36, %s1631_s23 }
 0x8e0   :  { %v701_v47 = vpop.permute.xlu1 %700 }
 0x8e1   :  { %v703_v4 = vmul.f32 %v701_v47, %v698_v2 }
 0x8e3   :  { %v2069_v6 = vadd.f32 %v704_v5, %v703_v4 }
 0x8e5   :  { %v2073_v8 = vadd.f32 %v714_v7, %v2069_v6 }
 0x90a   :  { %v659_v40 = vpop.permute.xlu0 %658 }
 0x90b   :  { %v661_v32 = vmul.f32 %v659_v40, %v656_v39 }
 0x90d   :  { %v663_v60 = vadd.f32 %v662_v35, %v661_v32 }
 0x90f   :  { %v2064_v45 = vadd.f32 %v712_v44, %v663_v60 }
 0x911   :  { %719 = vrot.lane.b32.xlu2 %v2064_v45, %s1631_s23 }
 0x96b   :  { %v720_v9 = vpop.permute.xlu2 %719 }
 0x96c   :  { %v722_v38 = vsel %vm145_vm2, %v720_v9, %v2073_v8 }
 0x96d   :  { %v723_v10 = vsel %vm147_vm3, %v722_v38, %v1851_v29 }
 0x96e   :  { %1472 = vmatmul.msk.f32.vlgmr.msra.gmra.mxu3 %vm149_vm4, %v723_v10  ;;  %1473 = vmatmul.msk.f32.vlgmr.msrb.gmra.mxu0 %vm149_vm4, %v723_v10 }
 0x96f   :  { %1301 = vmatpush.msra.mxu3 %v1611_v13  ;;  %1321 = vmatpush.msrb.mxu0 %v1612_v43 }
 0x971   :  { %1302 = vmatpush.msra.mxu3 %v1613_v14  ;;  %1322 = vmatpush.msrb.mxu0 %v1614_v15 }
 0x973   :  { %1303 = vmatpush.msra.mxu3 %v1615_v16  ;;  %1323 = vmatpush.msrb.mxu0 %v1616_v18 }
 0x975   :  { %1304 = vmatpush.msra.mxu3 %v1617_v19  ;;  %1324 = vmatpush.msrb.mxu0 %v1618_v21 }
 0x977   :  { %1305 = vmatpush.msra.mxu3 %v1619_v22  ;;  %1325 = vmatpush.msrb.mxu0 %v1620_v3 }
 0x979   :  { %1306 = vmatpush.msra.mxu3 %v1621_v49  ;;  %1326 = vmatpush.msrb.mxu0 %v1622_v50  ;;  %v854_v49 = vmul.f32 0.0, %v2064_v45 }
 0x97b   :  { %1307 = vmatpush.msra.mxu3 %v1623_v51  ;;  %1327 = vmatpush.msrb.mxu0 %v1624_v52 }
 0x97d   :  { %1308 = vmatpush.msra.mxu3 %v1625_v53  ;;  %1328 = vmatpush.msrb.mxu0 %v1626_v55 }
 0x97f   :  { %1309 = vmatpush.msra.mxu3 %v1789_v24  ;;  %1329 = vmatpush.msrb.mxu0 %v1794_v25 }
 0x9eb   :  { %v764_v54 = vpop.f32.mrf.mxu0 }
 0x9ec   :  { %830 = vrot.lane.b32.xlu1 %v764_v54, %s1628_s25  ;;  %v1475_v24 = vmul.f32 -1.442695, %v764_v54 }
 0x9ee   :  { %1551 = vpow2.f32 %v1475_v24 }
 0x9f1   :  { %v744_v26 = vpop.f32.mrf.mxu3 }
 0x9f2   :  { %788 = vrot.lane.b32.xlu0 %v744_v26, %s1630_s16  ;;  %v767_v62 = vadd.f32 %v744_v26, %v91_v61 }
 0x9f4   :  { %v1474_v25 = vmul.f32 -1.442695, %v767_v62  ;;  %v1552_v63 = vpop.eup %1551 }
 0x9f5   :  { %v809_v0 = vadd.f32 1.0, %v1552_v63 }
 0x9f6   :  { %1553 = vpow2.f32 %v1474_v25 }
 0x9f7   :  { %1555 = vrcp.f32 %v809_v0  ;;  %v821_v33 = vand.u32 2147483648, %v809_v0  ;;  %vm815_vm13 = vweird.f32 %v809_v0  ;;  %v819_v37 = vand.u32 2147483647, %v809_v0 }
 0x9f9   :  { %v822_v20 = vor.u32 1.1754944e-38, %v821_v33  ;;  %vm820_vm15 = vcmp.eq.f32.partialorder %v819_v37, 8.507059e+37 }
 0x9fa   :  { %826 = vrot.lane.b32.xlu0 %v764_v54, %s1631_s23 }
 0x9fc   :  { %v1554_v41 = vpop.eup %1553 }
 0x9fd   :  { %v771_v11 = vadd.f32 1.0, %v1554_v41  ;;  %v1556_v12 = vpop.eup %1555 }
 0x9fe   :  { %v811_v17 = vmul.f32 %v1556_v12, %v809_v0  ;;  %vm816_vm1 = vweird.f32 %v1556_v12 }
 0x9ff   :  { %1557 = vrcp.f32 %v771_v11  ;;  %vm817_vm14 = vmor %vm815_vm13, %vm816_vm1  ;;  %v783_v32 = vand.u32 2147483648, %v771_v11  ;;  %vm777_vm5 = vweird.f32 %v771_v11  ;;  %v781_v44 = vand.u32 2147483647, %v771_v11 }
 0xa00   :  { %v812_v23 = vsub.f32 1.0, %v811_v17 }
 0xa01   :  { %v784_v2 = vor.u32 1.1754944e-38, %v783_v32  ;;  %vm782_vm7 = vcmp.eq.f32.partialorder %v781_v44, 8.507059e+37 }
 0xa02   :  { %v813_v31 = vmul.f32 %v1556_v12, %v812_v23 }
 0xa04   :  { %v814_v36 = vadd.f32 %v1556_v12, %v813_v31 }
 0xa05   :  { %v1558_v48 = vpop.eup %1557 }
 0xa06   :  { %v773_v30 = vmul.f32 %v1558_v48, %v771_v11  ;;  %v818_v28 = vsel %vm817_vm14, %v1556_v12, %v814_v36  ;;  %vm778_vm0 = vweird.f32 %v1558_v48 }
 0xa07   :  { %v823_v35 = vsel %vm820_vm15, %v822_v20, %v818_v28  ;;  %vm779_vm6 = vmor %vm777_vm5, %vm778_vm0 }
 0xa08   :  { %v774_v34 = vsub.f32 1.0, %v773_v30  ;;  %v840_v52 = vsub.f32 1.0, %v823_v35  ;;  %v846_v55 = vmul.f32 %v823_v35, %v2073_v8 }
 0xa0a   :  { %v775_v27 = vmul.f32 %v1558_v48, %v774_v34 }
 0xa0c   :  { %v776_v39 = vadd.f32 %v1558_v48, %v775_v27 }
 0xa0e   :  { %v780_v47 = vsel %vm779_vm6, %v1558_v48, %v776_v39 }
 0xa0f   :  { %v785_v5 = vsel %vm782_vm7, %v784_v2, %v780_v47 }
 0xa10   :  { %v798_v18 = vsub.f32 1.0, %v785_v5  ;;  %v804_v21 = vmul.f32 %v785_v5, %v2064_v45 }
 0xa5e   :  { %v831_v40 = vpop.permute.xlu1 %830 }
 0xa5f   :  { %v833_v60 = vmul.f32 %v831_v40, %v823_v35 }
 0xa61   :  { %835 = vrot.lane.b32.xlu1 %v833_v60, %s1630_s16 }
 0xa64   :  { %v789_v4 = vpop.permute.xlu0 %788 }
 0xa65   :  { %v791_v7 = vmul.f32 %v789_v4, %v785_v5 }
 0xa67   :  { %793 = vrot.lane.b32.xlu2 %v791_v7, %s1630_s16 }
 0xa6c   :  { %v827_v13 = vpop.permute.xlu0 %826 }
 0xa6d   :  { %v829_v43 = vsub.f32 %v764_v54, %v827_v13  ;;  %v856_v54 = vmul.f32 0.0, %v2073_v8  ;;  %v2170_v8 = vld [vmem:[%s2341_s3] ss:$0 sm:$0xff] }
 0xa6e   :  { %v94_v63 = vadd.f32 %v2170_v8, %v2131_v57 }
 0xac1   :  { %v794_v9 = vpop.permute.xlu2 %793 }
 0xac2   :  { %v796_v38 = vadd.f32 %v794_v9, %v91_v61 }
 0xac4   :  { %1559 = vtanh.f32 %v796_v38 }
 0xaca   :  { %v1560_v10 = vpop.eup %1559 }
 0xacb   :  { %800 = vrot.lane.b32.xlu2 %v1560_v10, %s1631_s23 }
 0xad3   :  { %v836_v14 = vpop.permute.xlu1 %835 }
 0xad4   :  { %v838_v15 = vadd.f32 %v836_v14, %v829_v43 }
 0xad6   :  { %1561 = vtanh.f32 %v838_v15 }
 0xadc   :  { %v1562_v16 = vpop.eup %1561 }
 0xadd   :  { %842 = vrot.lane.b32.xlu0 %v1562_v16, %s1631_s23 }
 0xb25   :  { %v801_v19 = vpop.permute.xlu2 %800 }
 0xb26   :  { %v803_v22 = vmul.f32 %v801_v19, %v798_v18 }
 0xb28   :  { %v805_v3 = vadd.f32 %v804_v21, %v803_v22 }
 0xb2a   :  { %v2147_v50 = vadd.f32 %v854_v49, %v805_v3 }
 0xb2c   :  { %861 = vrot.lane.b32.xlu1 %v2147_v50, %s1631_s23 }
 0xb4f   :  { %v843_v51 = vpop.permute.xlu0 %842 }
 0xb50   :  { %v845_v53 = vmul.f32 %v843_v51, %v840_v52 }
 0xb52   :  { %v2152_v56 = vadd.f32 %v846_v55, %v845_v53  ;;  %v996_v53 = vmul.f32 0.0, %v2147_v50 }
 0xb54   :  { %v2156_v26 = vadd.f32 %v856_v54, %v2152_v56 }
 0xb9e   :  { %v862_v61 = vpop.permute.xlu1 %861 }
 0xb9f   :  { %v864_v45 = vsel %vm145_vm2, %v862_v61, %v2156_v26 }
 0xba0   :  { %v865_v24 = vsel %vm147_vm3, %v864_v45, %v1851_v29 }
 0xba1   :  { %1477 = vmatmul.msk.f32.vlgmr.msrb.gmra.mxu1 %vm149_vm4, %v865_v24  ;;  %1478 = vmatmul.msk.f32.vlgmr.msrb.gmra.mxu2 %vm149_vm4, %v865_v24 }
 0xc1e   :  { %v886_v62 = vpop.f32.mrf.mxu1 }
 0xc1f   :  { %930 = vrot.lane.b32.xlu2 %v886_v62, %s1630_s16  ;;  %v909_v0 = vadd.f32 %v886_v62, %v94_v63 }
 0xc21   :  { %v1479_v41 = vmul.f32 -1.442695, %v909_v0 }
 0xc23   :  { %1563 = vpow2.f32 %v1479_v41 }
 0xc24   :  { %v906_v25 = vpop.f32.mrf.mxu2 }
 0xc25   :  { %972 = vrot.lane.b32.xlu0 %v906_v25, %s1628_s25  ;;  %v1480_v23 = vmul.f32 -1.442695, %v906_v25 }
 0xc27   :  { %968 = vrot.lane.b32.xlu2 %v906_v25, %s1631_s23 }
 0xc29   :  { %v1564_v11 = vpop.eup %1563 }
 0xc2a   :  { %v913_v12 = vadd.f32 1.0, %v1564_v11 }
 0xc2c   :  { %1565 = vrcp.f32 %v913_v12  ;;  %v925_v36 = vand.u32 2147483648, %v913_v12  ;;  %vm919_vm9 = vweird.f32 %v913_v12  ;;  %v923_v37 = vand.u32 2147483647, %v913_v12 }
 0xc2d   :  { %1567 = vpow2.f32 %v1480_v23 }
 0xc2e   :  { %v926_v28 = vor.u32 1.1754944e-38, %v925_v36  ;;  %vm924_vm11 = vcmp.eq.f32.partialorder %v923_v37, 8.507059e+37 }
 0xc32   :  { %v1566_v17 = vpop.eup %1565 }
 0xc33   :  { %v915_v48 = vmul.f32 %v1566_v17, %v913_v12  ;;  %vm920_vm8 = vweird.f32 %v1566_v17  ;;  %v1568_v33 = vpop.eup %1567 }
 0xc34   :  { %vm921_vm10 = vmor %vm919_vm9, %vm920_vm8  ;;  %v951_v27 = vadd.f32 1.0, %v1568_v33 }
 0xc35   :  { %v916_v30 = vsub.f32 1.0, %v915_v48 }
 0xc36   :  { %1569 = vrcp.f32 %v951_v27  ;;  %v963_v2 = vand.u32 2147483648, %v951_v27  ;;  %vm957_vm1 = vweird.f32 %v951_v27  ;;  %v961_v4 = vand.u32 2147483647, %v951_v27 }
 0xc37   :  { %v917_v31 = vmul.f32 %v1566_v17, %v916_v30  ;;  %v97_v30 = vadd.f32 %v2170_v8, %v2133_v58 }
 0xc38   :  { %v964_v7 = vor.u32 1.1754944e-38, %v963_v2  ;;  %vm962_vm14 = vcmp.eq.f32.partialorder %v961_v4, 8.507059e+37 }
 0xc39   :  { %v918_v34 = vadd.f32 %v1566_v17, %v917_v31 }
 0xc3b   :  { %v922_v57 = vsel %vm921_vm10, %v1566_v17, %v918_v34 }
 0xc3c   :  { %v927_v39 = vsel %vm924_vm11, %v926_v28, %v922_v57  ;;  %v1570_v35 = vpop.eup %1569 }
 0xc3d   :  { %v953_v32 = vmul.f32 %v1570_v35, %v951_v27  ;;  %vm958_vm12 = vweird.f32 %v1570_v35  ;;  %v940_v22 = vsub.f32 1.0, %v927_v39  ;;  %v946_v49 = vmul.f32 %v927_v39, %v2147_v50 }
 0xc3e   :  { %vm959_vm13 = vmor %vm957_vm1, %vm958_vm12 }
 0xc3f   :  { %v954_v60 = vsub.f32 1.0, %v953_v32 }
 0xc41   :  { %v955_v44 = vmul.f32 %v1570_v35, %v954_v60 }
 0xc43   :  { %v956_v47 = vadd.f32 %v1570_v35, %v955_v44 }
 0xc45   :  { %v960_v5 = vsel %vm959_vm13, %v1570_v35, %v956_v47 }
 0xc46   :  { %v965_v38 = vsel %vm962_vm14, %v964_v7, %v960_v5 }
 0xc47   :  { %v982_v61 = vsub.f32 1.0, %v965_v38  ;;  %v988_v24 = vmul.f32 %v965_v38, %v2156_v26 }
 0xc79   :  { %v931_v20 = vpop.permute.xlu2 %930 }
 0xc7a   :  { %v933_v40 = vmul.f32 %v931_v20, %v927_v39 }
 0xc7c   :  { %935 = vrot.lane.b32.xlu1 %v933_v40, %s1630_s16 }
 0xc81   :  { %v969_v15 = vpop.permute.xlu2 %968 }
 0xc82   :  { %v971_v16 = vsub.f32 %v906_v25, %v969_v15  ;;  %v998_v25 = vmul.f32 0.0, %v2156_v26 }
 0xc97   :  { %v973_v9 = vpop.permute.xlu0 %972 }
 0xc98   :  { %v975_v10 = vmul.f32 %v973_v9, %v965_v38 }
 0xc9a   :  { %977 = vrot.lane.b32.xlu0 %v975_v10, %s1630_s16 }
 0xcee   :  { %v936_v13 = vpop.permute.xlu1 %935 }
 0xcef   :  { %v938_v43 = vadd.f32 %v936_v13, %v94_v63 }
 0xcf1   :  { %1571 = vtanh.f32 %v938_v43 }
 0xcf7   :  { %v1572_v14 = vpop.eup %1571 }
 0xcf8   :  { %942 = vrot.lane.b32.xlu1 %v1572_v14, %s1631_s23 }
 0xd0c   :  { %v978_v18 = vpop.permute.xlu0 %977 }
 0xd0d   :  { %v980_v19 = vadd.f32 %v978_v18, %v971_v16 }
 0xd0f   :  { %1573 = vtanh.f32 %v980_v19 }
 0xd15   :  { %v1574_v21 = vpop.eup %1573 }
 0xd16   :  { %984 = vrot.lane.b32.xlu2 %v1574_v21, %s1631_s23 }
 0xd6a   :  { %v943_v3 = vpop.permute.xlu1 %942 }
 0xd6b   :  { %v945_v51 = vmul.f32 %v943_v3, %v940_v22 }
 0xd6d   :  { %v947_v52 = vadd.f32 %v946_v49, %v945_v51 }
 0xd6f   :  { %v2180_v55 = vadd.f32 %v996_v53, %v947_v52 }
 0xd70   :  { %v985_v54 = vpop.permute.xlu2 %984 }
 0xd71   :  { %1003 = vrot.lane.b32.xlu0 %v2180_v55, %s1631_s23  ;;  %v987_v45 = vmul.f32 %v985_v54, %v982_v61 }
 0xd73   :  { %v2185_v62 = vadd.f32 %v988_v24, %v987_v45  ;;  %v1138_v45 = vmul.f32 0.0, %v2180_v55 }
 0xd75   :  { %v2189_v63 = vadd.f32 %v998_v25, %v2185_v62 }
 0xde3   :  { %v1004_v0 = vpop.permute.xlu0 %1003 }
 0xde4   :  { %v1006_v50 = vsel %vm145_vm2, %v1004_v0, %v2189_v63 }
 0xde5   :  { %v1007_v41 = vsel %vm147_vm3, %v1006_v50, %v1851_v29 }
 0xde6   :  { %1482 = vmatmul.msk.f32.vlgmr.msrb.gmra.mxu3 %vm149_vm4, %v1007_v41  ;;  %1483 = vmatmul.msk.f32.vlgmr.msra.gmra.mxu0 %vm149_vm4, %v1007_v41 }
 0xe63   :  { %v1048_v11 = vpop.f32.mrf.mxu0 }
 0xe64   :  { %1114 = vrot.lane.b32.xlu2 %v1048_v11, %s1628_s25  ;;  %v1485_v26 = vmul.f32 -1.442695, %v1048_v11 }
 0xe66   :  { %1575 = vpow2.f32 %v1485_v26 }
 0xe69   :  { %v1028_v12 = vpop.f32.mrf.mxu3 }
 0xe6a   :  { %1072 = vrot.lane.b32.xlu1 %v1028_v12, %s1630_s16  ;;  %v1051_v31 = vadd.f32 %v1028_v12, %v97_v30  ;;  %v1140_v12 = vmul.f32 0.0, %v2189_v63 }
 0xe6c   :  { %v1576_v17 = vpop.eup %1575  ;;  %v1484_v36 = vmul.f32 -1.442695, %v1051_v31 }
 0xe6d   :  { %v1093_v48 = vadd.f32 1.0, %v1576_v17 }
 0xe6f   :  { %1577 = vrcp.f32 %v1093_v48  ;;  %v1105_v27 = vand.u32 2147483648, %v1093_v48  ;;  %vm1099_vm0 = vweird.f32 %v1093_v48  ;;  %v1103_v20 = vand.u32 2147483647, %v1093_v48 }
 0xe70   :  { %1579 = vpow2.f32 %v1484_v36 }
 0xe71   :  { %v1106_v35 = vor.u32 1.1754944e-38, %v1105_v27  ;;  %vm1104_vm6 = vcmp.eq.f32.partialorder %v1103_v20, 8.507059e+37 }
 0xe72   :  { %1110 = vrot.lane.b32.xlu1 %v1048_v11, %s1631_s23 }
 0xe75   :  { %v1578_v23 = vpop.eup %1577 }
 0xe76   :  { %v1095_v34 = vmul.f32 %v1578_v23, %v1093_v48  ;;  %vm1100_vm15 = vweird.f32 %v1578_v23  ;;  %v1580_v28 = vpop.eup %1579 }
 0xe77   :  { %vm1101_vm5 = vmor %vm1099_vm0, %vm1100_vm15  ;;  %v1055_v40 = vadd.f32 1.0, %v1580_v28 }
 0xe78   :  { %v1096_v33 = vsub.f32 1.0, %v1095_v34 }
 0xe79   :  { %1581 = vrcp.f32 %v1055_v40  ;;  %v1067_v7 = vand.u32 2147483648, %v1055_v40  ;;  %vm1061_vm8 = vweird.f32 %v1055_v40  ;;  %v1065_v9 = vand.u32 2147483647, %v1055_v40 }
 0xe7a   :  { %v1097_v37 = vmul.f32 %v1578_v23, %v1096_v33 }
 0xe7b   :  { %v1068_v10 = vor.u32 1.1754944e-38, %v1067_v7  ;;  %vm1066_vm10 = vcmp.eq.f32.partialorder %v1065_v9, 8.507059e+37 }
 0xe7c   :  { %v1098_v57 = vadd.f32 %v1578_v23, %v1097_v37 }
 0xe7e   :  { %v1102_v39 = vsel %vm1101_vm5, %v1578_v23, %v1098_v57 }
 0xe7f   :  { %v1107_v60 = vsel %vm1104_vm6, %v1106_v35, %v1102_v39  ;;  %v1582_v44 = vpop.eup %1581 }
 0xe80   :  { %v1057_v47 = vmul.f32 %v1582_v44, %v1055_v40  ;;  %vm1062_vm7 = vweird.f32 %v1582_v44  ;;  %v1124_v0 = vsub.f32 1.0, %v1107_v60  ;;  %v1130_v41 = vmul.f32 %v1107_v60, %v2189_v63 }
 0xe81   :  { %vm1063_vm9 = vmor %vm1061_vm8, %vm1062_vm7  ;;  %v2230_v63 = vadd.f32 %v2170_v8, %v2135_v59 }
 0xe82   :  { %v1058_v2 = vsub.f32 1.0, %v1057_v47 }
 0xe84   :  { %v1059_v4 = vmul.f32 %v1582_v44, %v1058_v2 }
 0xe86   :  { %v1060_v5 = vadd.f32 %v1582_v44, %v1059_v4 }
 0xe88   :  { %v1064_v38 = vsel %vm1063_vm9, %v1582_v44, %v1060_v5 }
 0xe89   :  { %v1069_v43 = vsel %vm1066_vm10, %v1068_v10, %v1064_v38 }
 0xe8a   :  { %v1082_v51 = vsub.f32 1.0, %v1069_v43  ;;  %v1088_v53 = vmul.f32 %v1069_v43, %v2180_v55 }
 0xebe   :  { %v1115_v32 = vpop.permute.xlu2 %1114 }
 0xebf   :  { %v1117_v58 = vmul.f32 %v1115_v32, %v1107_v60 }
 0xec1   :  { %1119 = vrot.lane.b32.xlu2 %v1117_v58, %s1630_s16 }
 0xedc   :  { %v1073_v13 = vpop.permute.xlu1 %1072 }
 0xedd   :  { %v1075_v14 = vmul.f32 %v1073_v13, %v1069_v43 }
 0xedf   :  { %1077 = vrot.lane.b32.xlu0 %v1075_v14, %s1630_s16 }
 0xee4   :  { %v1111_v15 = vpop.permute.xlu1 %1110 }
 0xee5   :  { %v1113_v16 = vsub.f32 %v1048_v11, %v1111_v15 }
 0xf1b   :  { %v1120_v18 = vpop.permute.xlu2 %1119 }
 0xf1c   :  { %v1122_v19 = vadd.f32 %v1120_v18, %v1113_v16 }
 0xf1e   :  { %1583 = vtanh.f32 %v1122_v19 }
 0xf24   :  { %v1584_v21 = vpop.eup %1583 }
 0xf25   :  { %1126 = vrot.lane.b32.xlu1 %v1584_v21, %s1631_s23 }
 0xf51   :  { %v1078_v22 = vpop.permute.xlu0 %1077 }
 0xf52   :  { %v1080_v3 = vadd.f32 %v1078_v22, %v97_v30 }
 0xf54   :  { %1585 = vtanh.f32 %v1080_v3 }
 0xf5a   :  { %v1586_v49 = vpop.eup %1585 }
 0xf5b   :  { %1084 = vrot.lane.b32.xlu0 %v1586_v49, %s1631_s23 }
 0xf97   :  { %v1127_v25 = vpop.permute.xlu1 %1126 }
 0xf98   :  { %v1129_v50 = vmul.f32 %v1127_v25, %v1124_v0 }
 0xf9a   :  { %v2213_v11 = vadd.f32 %v1130_v41, %v1129_v50 }
 0xf9c   :  { %v2217_v26 = vadd.f32 %v1140_v12, %v2213_v11 }
 0xfcd   :  { %v1085_v52 = vpop.permute.xlu0 %1084 }
 0xfce   :  { %v1087_v54 = vmul.f32 %v1085_v52, %v1082_v51 }
 0xfd0   :  { %v1089_v61 = vadd.f32 %v1088_v53, %v1087_v54 }
 0xfd2   :  { %v2208_v24 = vadd.f32 %v1138_v45, %v1089_v61 }
 0xfd4   :  { %1145 = vrot.lane.b32.xlu2 %v2208_v24, %s1631_s23  ;;  %v1280_v0 = vmul.f32 0.0, %v2208_v24 }
0x102e   :  { %v1146_v17 = vpop.permute.xlu2 %1145 }
0x102f   :  { %v1148_v55 = vsel %vm145_vm2, %v1146_v17, %v2217_v26 }
0x1030   :  { %v1149_v48 = vsel %vm147_vm3, %v1148_v55, %v1851_v29 }
0x1031   :  { %1487 = vmatmul.msk.f32.vlgmr.msra.gmra.mxu1 %vm149_vm4, %v1149_v48  ;;  %1488 = vmatmul.msk.f32.vlgmr.msra.gmra.mxu2 %vm149_vm4, %v1149_v48 }
0x10ae   :  { %v1170_v23 = vpop.f32.mrf.mxu1 }
0x10af   :  { %1214 = vrot.lane.b32.xlu0 %v1170_v23, %s1630_s16  ;;  %v1193_v31 = vadd.f32 %v1170_v23, %v2230_v63  ;;  %v1282_v23 = vmul.f32 0.0, %v2217_v26 }
0x10b1   :  { %v1489_v34 = vmul.f32 -1.442695, %v1193_v31 }
0x10b3   :  { %1587 = vpow2.f32 %v1489_v34 }
0x10b4   :  { %v1190_v30 = vpop.f32.mrf.mxu2 }
0x10b5   :  { %1256 = vrot.lane.b32.xlu1 %v1190_v30, %s1628_s25  ;;  %v1490_v36 = vmul.f32 -1.442695, %v1190_v30 }
0x10b7   :  { %1252 = vrot.lane.b32.xlu0 %v1190_v30, %s1631_s23  ;;  %1589 = vpow2.f32 %v1490_v36 }
0x10b9   :  { %v1588_v33 = vpop.eup %1587 }
0x10ba   :  { %v1197_v37 = vadd.f32 1.0, %v1588_v33 }
0x10bc   :  { %1591 = vrcp.f32 %v1197_v37  ;;  %v1209_v60 = vand.u32 2147483648, %v1197_v37  ;;  %vm1203_vm12 = vweird.f32 %v1197_v37  ;;  %v1207_v58 = vand.u32 2147483647, %v1197_v37 }
0x10bd   :  { %v1590_v57 = vpop.eup %1589 }
0x10be   :  { %v1235_v27 = vadd.f32 1.0, %v1590_v57  ;;  %v1210_v2 = vor.u32 1.1754944e-38, %v1209_v60  ;;  %vm1208_vm13 = vcmp.eq.f32.partialorder %v1207_v58, 8.507059e+37 }
0x10c0   :  { %1593 = vrcp.f32 %v1235_v27  ;;  %v1247_v9 = vand.u32 2147483648, %v1235_v27  ;;  %vm1241_vm15 = vweird.f32 %v1235_v27  ;;  %v1245_v10 = vand.u32 2147483647, %v1235_v27 }
0x10c2   :  { %v1592_v28 = vpop.eup %1591  ;;  %v1248_v43 = vor.u32 1.1754944e-38, %v1247_v9  ;;  %vm1246_vm5 = vcmp.eq.f32.partialorder %v1245_v10, 8.507059e+37 }
0x10c3   :  { %v1199_v20 = vmul.f32 %v1592_v28, %v1197_v37  ;;  %vm1204_vm11 = vweird.f32 %v1592_v28 }
0x10c4   :  { %vm1205_vm1 = vmor %vm1203_vm12, %vm1204_vm11 }
0x10c5   :  { %v1200_v40 = vsub.f32 1.0, %v1199_v20 }
0x10c6   :  { %v1594_v39 = vpop.eup %1593 }
0x10c7   :  { %v1237_v35 = vmul.f32 %v1594_v39, %v1235_v27  ;;  %v1201_v32 = vmul.f32 %v1592_v28, %v1200_v40  ;;  %vm1242_vm14 = vweird.f32 %v1594_v39 }
0x10c8   :  { %vm1243_vm0 = vmor %vm1241_vm15, %vm1242_vm14 }
0x10c9   :  { %v1238_v59 = vsub.f32 1.0, %v1237_v35  ;;  %v1202_v8 = vadd.f32 %v1592_v28, %v1201_v32 }
0x10cb   :  { %v1239_v44 = vmul.f32 %v1594_v39, %v1238_v59  ;;  %v1206_v47 = vsel %vm1205_vm1, %v1592_v28, %v1202_v8 }
0x10cc   :  { %v1211_v7 = vsel %vm1208_vm13, %v1210_v2, %v1206_v47 }
0x10cd   :  { %v1240_v4 = vadd.f32 %v1594_v39, %v1239_v44  ;;  %v1224_v53 = vsub.f32 1.0, %v1211_v7  ;;  %v1230_v61 = vmul.f32 %v1211_v7, %v2208_v24 }
0x10cf   :  { %v1244_v13 = vsel %vm1243_vm0, %v1594_v39, %v1240_v4 }
0x10d0   :  { %v1249_v15 = vsel %vm1246_vm5, %v1248_v43, %v1244_v13 }
0x10d1   :  { %v1266_v12 = vsub.f32 1.0, %v1249_v15  ;;  %v1272_v55 = vmul.f32 %v1249_v15, %v2217_v26 }
0x1121   :  { %v1215_v5 = vpop.permute.xlu0 %1214 }
0x1122   :  { %v1217_v38 = vmul.f32 %v1215_v5, %v1211_v7 }
0x1124   :  { %1219 = vrot.lane.b32.xlu2 %v1217_v38, %s1630_s16 }
0x1127   :  { %v1257_v14 = vpop.permute.xlu1 %1256 }
0x1128   :  { %v1259_v16 = vmul.f32 %v1257_v14, %v1249_v15 }
0x1129   :  { %v1253_v22 = vpop.permute.xlu0 %1252 }
0x112a   :  { %1261 = vrot.lane.b32.xlu1 %v1259_v16, %s1630_s16  ;;  %v1255_v3 = vsub.f32 %v1190_v30, %v1253_v22 }
0x117e   :  { %v1220_v18 = vpop.permute.xlu2 %1219 }
0x117f   :  { %v1222_v19 = vadd.f32 %v1220_v18, %v2230_v63 }
0x1181   :  { %1595 = vtanh.f32 %v1222_v19 }
0x1187   :  { %v1596_v21 = vpop.eup %1595 }
0x1188   :  { %1226 = vrot.lane.b32.xlu2 %v1596_v21, %s1631_s23 }
0x119c   :  { %v1262_v49 = vpop.permute.xlu1 %1261 }
0x119d   :  { %v1264_v51 = vadd.f32 %v1262_v49, %v1255_v3 }
0x119f   :  { %1597 = vtanh.f32 %v1264_v51 }
0x11a5   :  { %v1598_v52 = vpop.eup %1597 }
0x11a6   :  { %1268 = vrot.lane.b32.xlu0 %v1598_v52, %s1631_s23 }
0x11e2   :  { %v1227_v54 = vpop.permute.xlu2 %1226 }
0x11e3   :  { %v1229_v45 = vmul.f32 %v1227_v54, %v1224_v53 }
0x11e5   :  { %v1231_v25 = vadd.f32 %v1230_v61, %v1229_v45 }
0x11e7   :  { %v2240_v50 = vadd.f32 %v1280_v0, %v1231_v25 }
0x11e9   :  { %1286 = vrot.lane.b32.xlu1 %v2240_v50, %s1631_s23 }
0x1218   :  { %v1269_v41 = vpop.permute.xlu0 %1268 }
0x1219   :  { %v1271_v17 = vmul.f32 %v1269_v41, %v1266_v12 }
0x121b   :  { %v2245_v48 = vadd.f32 %v1272_v55, %v1271_v17 }
0x121d   :  { %v2249_v30 = vadd.f32 %v1282_v23, %v2245_v48 }
0x121f   :  { %v1423_v25 = vmul.f32 0.0, %v2249_v30 }
0x125b   :  { %v1287_v31 = vpop.permute.xlu1 %1286 }
0x125c   :  { %v1289_v24 = vsel %vm145_vm2, %v1287_v31, %v2249_v30 }
0x125d   :  { %v1290_v34 = vsel %vm147_vm3, %v1289_v24, %v1851_v29 }
0x125e   :  { %1492 = vmatmul.msk.f32.vlgmr.msra.gmra.mxu3 %vm149_vm4, %v1290_v34  ;;  %1493 = vmatmul.msk.f32.vlgmr.msrb.gmra.mxu0 %vm149_vm4, %v1290_v34 }
0x12db   :  { %v2257_v36 = vpop.f32.mrf.mxu0 }
0x12dc   :  { %1397 = vrot.lane.b32.xlu0 %v2257_v36, %s1628_s25  ;;  %v1495_v27 = vmul.f32 -1.442695, %v2257_v36 }
0x12e1   :  { %v1311_v26 = vpop.f32.mrf.mxu3 }
0x12e2   :  { %1355 = vrot.lane.b32.xlu2 %v1311_v26, %s1630_s16  ;;  %v1334_v33 = vadd.f32 %v1311_v26, %v2230_v63 }
0x12e4   :  { %v1494_v37 = vmul.f32 -1.442695, %v1334_v33 }
0x12e6   :  { %1599 = vpow2.f32 %v1494_v37 }
0x12ea   :  { %1393 = vrot.lane.b32.xlu2 %v2257_v36, %s1631_s23 }
0x12ec   :  { %v1600_v29 = vpop.eup %1599 }
0x12ed   :  { %v1338_v57 = vadd.f32 1.0, %v1600_v29 }
0x12ef   :  { %1601 = vrcp.f32 %v1338_v57  ;;  %v1350_v8 = vand.u32 2147483648, %v1338_v57  ;;  %vm1344_vm4 = vweird.f32 %v1338_v57  ;;  %v1348_v60 = vand.u32 2147483647, %v1338_v57 }
0x12f0   :  { %1603 = vpow2.f32 %v1495_v27 }
0x12f1   :  { %v1351_v47 = vor.u32 1.1754944e-38, %v1350_v8  ;;  %vm1349_vm7 = vcmp.eq.f32.partialorder %v1348_v60, 8.507059e+37 }
0x12f5   :  { %v1602_v28 = vpop.eup %1601 }
0x12f6   :  { %v1340_v20 = vmul.f32 %v1602_v28, %v1338_v57  ;;  %v1604_v39 = vpop.eup %1603  ;;  %vm1345_vm3 = vweird.f32 %v1602_v28 }
0x12f7   :  { %v1376_v35 = vadd.f32 1.0, %v1604_v39  ;;  %vm1346_vm6 = vmor %vm1344_vm4, %vm1345_vm3 }
0x12f8   :  { %v1341_v40 = vsub.f32 1.0, %v1340_v20 }
0x12f9   :  { %1605 = vrcp.f32 %v1376_v35  ;;  %v1388_v13 = vand.u32 2147483648, %v1376_v35  ;;  %vm1382_vm9 = vweird.f32 %v1376_v35  ;;  %v1386_v43 = vand.u32 2147483647, %v1376_v35 }
0x12fa   :  { %v1342_v32 = vmul.f32 %v1602_v28, %v1341_v40 }
0x12fb   :  { %v1389_v15 = vor.u32 1.1754944e-38, %v1388_v13  ;;  %vm1387_vm11 = vcmp.eq.f32.partialorder %v1386_v43, 8.507059e+37 }
0x12fc   :  { %v1343_v59 = vadd.f32 %v1602_v28, %v1342_v32 }
0x12fe   :  { %v1347_v44 = vsel %vm1346_vm6, %v1602_v28, %v1343_v59 }
0x12ff   :  { %v1606_v58 = vpop.eup %1605  ;;  %v1352_v5 = vsel %vm1349_vm7, %v1351_v47, %v1347_v44 }
0x1300   :  { %v1378_v2 = vmul.f32 %v1606_v58, %v1376_v35  ;;  %vm1383_vm8 = vweird.f32 %v1606_v58  ;;  %v1371_v12 = vmul.f32 %v1352_v5, %v2240_v50 }
0x1301   :  { %vm1384_vm10 = vmor %vm1382_vm9, %vm1383_vm8 }
0x1302   :  { %v1379_v9 = vsub.f32 1.0, %v1378_v2 }
0x1304   :  { %v1380_v38 = vmul.f32 %v1606_v58, %v1379_v9 }
0x1306   :  { %v1381_v10 = vadd.f32 %v1606_v58, %v1380_v38 }
0x1308   :  { %v1385_v14 = vsel %vm1384_vm10, %v1606_v58, %v1381_v10 }
0x1309   :  { %v1390_v18 = vsel %vm1387_vm11, %v1389_v15, %v1385_v14 }
0x130a   :  { %v1413_v54 = vmul.f32 %v1390_v18, %v2249_v30 }
0x133c   :  { %v1356_v4 = vpop.permute.xlu2 %1355 }
0x133d   :  { %v1358_v7 = vmul.f32 %v1356_v4, %v1352_v5 }
0x133f   :  { %1360 = vrot.lane.b32.xlu1 %v1358_v7, %s1630_s16 }
0x1344   :  { %v1394_v49 = vpop.permute.xlu2 %1393 }
0x1345   :  { %v1396_v51 = vsub.f32 %v2257_v36, %v1394_v49 }
0x134e   :  { %v1398_v16 = vpop.permute.xlu0 %1397 }
0x134f   :  { %v1400_v19 = vmul.f32 %v1398_v16, %v1390_v18 }
0x1351   :  { %1402 = vrot.lane.b32.xlu0 %v1400_v19, %s1630_s16 }
0x1359   :  { %279 = vrot.lane.b32.xlu0 %v1910_v46, %s1631_s23 }
0x1361   :  { %707 = vrot.lane.b32.xlu0 %v2069_v6, %s1631_s23 }
0x1369   :  { %1133 = vrot.lane.b32.xlu0 %v2213_v11, %s1631_s23 }
0x13b1   :  { %v1361_v21 = vpop.permute.xlu1 %1360 }
0x13b2   :  { %v1363_v22 = vadd.f32 %v1361_v21, %v2230_v63 }
0x13b4   :  { %1607 = vtanh.f32 %v1363_v22 }
0x13ba   :  { %v1608_v3 = vpop.eup %1607 }
0x13bb   :  { %1367 = vrot.lane.b32.xlu1 %v1608_v3, %s1631_s23 }
0x13c3   :  { %v1403_v52 = vpop.permute.xlu0 %1402  ;;  %424 = vrot.lane.b32.xlu1 %v1959_v1, %s1631_s23 }
0x13c4   :  { %v1405_v46 = vadd.f32 %v1403_v52, %v1396_v51 }
0x13c6   :  { %1609 = vtanh.f32 %v1405_v46 }
0x13cb   :  { %v280_v6 = vpop.permute.xlu0 %279  ;;  %849 = vrot.lane.b32.xlu1 %v2152_v56, %s1631_s23  ;;  %v1407_v56 = vsub.f32 1.0, %v1390_v18 }
0x13cc   :  { %v1610_v11 = vpop.eup %1609  ;;  %282 = vst.msk [vmem:[%s2344_s5] sm:$0xff] %vm145_vm2, %v280_v6 }
0x13cd   :  { %1409 = vrot.lane.b32.xlu2 %v1610_v11, %s1631_s23 }
0x13d3   :  { %v708_v63 = vpop.permute.xlu0 %707  ;;  %1275 = vrot.lane.b32.xlu1 %v2245_v48, %s1631_s23 }
0x13d4   :  { %1471 = vst.msk [vmem:[%s2344_s5 + $0x10] sm:$0xff] %vm145_vm2, %v708_v63 }
0x13d5   :  { %565 = vrot.lane.b32.xlu2 %v2008_v42, %s1631_s23  ;;  %v1365_v42 = vsub.f32 1.0, %v1352_v5 }
0x13db   :  { %v1134_v1 = vpop.permute.xlu0 %1133 }
0x13dc   :  { %1486 = vst.msk [vmem:[%s2344_s5 + $0x28] sm:$0xff] %vm145_vm2, %v1134_v1 }
0x13dd   :  { %991 = vrot.lane.b32.xlu2 %v2185_v62, %s1631_s23 }
0x1427   :  { %v1410_v53 = vpop.permute.xlu2 %1409 }
0x1428   :  { %v1412_v61 = vmul.f32 %v1410_v53, %v1407_v56 }
0x142a   :  { %v1414_v45 = vadd.f32 %v1413_v54, %v1412_v61 }
0x142c   :  { %1416 = vrot.lane.b32.xlu2 %v1414_v45, %s1631_s23  ;;  %v1424_v0 = vadd.f32 %v1423_v25, %v1414_v45 }
0x142d   :  { %v1368_v41 = vpop.permute.xlu1 %1367 }
0x142e   :  { %v1370_v17 = vmul.f32 %v1368_v41, %v1365_v42  ;;  %1431 = vrot.lane.b32.xlu1 %v1424_v0, %s1631_s23 }
0x142f   :  { %v566_v55 = vpop.permute.xlu2 %565 }
0x1430   :  { %v1372_v62 = vadd.f32 %v1371_v12, %v1370_v17  ;;  %1466 = vst.msk [vmem:[%s2344_s5 + $0x8] sm:$0xff] %vm145_vm2, %v566_v55 }
0x1432   :  { %v1421_v48 = vmul.f32 0.0, %v1372_v62 }
0x1434   :  { %v1422_v23 = vadd.f32 %v1421_v48, %v2240_v50 }
0x1435   :  { %v425_v30 = vpop.permute.xlu1 %424 }
0x1436   :  { %427 = vst.msk [vmem:[%s2344_s5] sm:$0xff] %vm145_vm2, %v425_v30  ;;  %1426 = vrot.lane.b32.xlu0 %v1422_v23, %s1631_s23 }
0x1437   :  { %v992_v31 = vpop.permute.xlu2 %991 }
0x1438   :  { %1481 = vst.msk [vmem:[%s2344_s5 + $0x20] sm:$0xff] %vm145_vm2, %v992_v31 }
0x143d   :  { %v850_v24 = vpop.permute.xlu1 %849 }
0x143e   :  { %1476 = vst.msk [vmem:[%s2344_s5 + $0x18] sm:$0xff] %vm145_vm2, %v850_v24 }
0x1445   :  { %v1276_v50 = vpop.permute.xlu1 %1275 }
0x1446   :  { %1491 = vst.msk [vmem:[%s2344_s5 + $0x30] sm:$0xff] %vm145_vm2, %v1276_v50 }
0x1486   :  { %v1417_v34 = vpop.permute.xlu2 %1416 }
0x1487   :  { %1496 = vst.msk [vmem:[%s2344_s5 + $0x38] sm:$0xff] %vm145_vm2, %v1417_v34 }
0x14a0   :  { %v1432_v36 = vpop.permute.xlu1 %1431 }
0x14a1   :  { %1497 = vst.msk [vmem:[%s2345_s6 + $0x8] sm:$0xff] %vm145_vm2, %v1432_v36 }
0x14a8   :  { %v1427_v26 = vpop.permute.xlu0 %1426 }
0x14a9   :  { %1429 = vst.msk [vmem:[%s2345_s6] sm:$0xff] %vm145_vm2, %v1427_v26 }

</bundles_post_ra>
